<compile_context>
chip_gen: v6e
topology: v6e:2x2x1
jax: 0.10.0
libtpu: 0.0.40
codegen_flags: <defaults>
</compile_context>

<pallas_src>
import jax
import jax.numpy as jnp
from jax.experimental import pallas as pl
from jax.experimental.pallas import tpu as pltpu  # noqa: F401  (TPU backend namespace)


# ----------------------------------------------------------------------------
# Pallas kernels
# ----------------------------------------------------------------------------
def _matmul_bias_kernel(x_ref, w_ref, b_ref, o_ref):
    # (M, K) @ (K, N) + (1, N) -> (M, N) on the MXU, f32 accumulate.
    acc = jnp.dot(x_ref[...], w_ref[...], preferred_element_type=jnp.float32)
    o_ref[...] = (acc + b_ref[...]).astype(o_ref.dtype)


def _pool_relu_bn_kernel(a_ref, b_ref, c_ref, d_ref, g_ref, be_ref, o_ref):
    # Inputs are the four 2x2-pooling shifts, laid out channel-major as (C, N*Ho*Wo).
    m = jnp.maximum(jnp.maximum(a_ref[...], b_ref[...]),
                    jnp.maximum(c_ref[...], d_ref[...]))
    r = jnp.maximum(m, 0.0)                                  # ReLU
    mean = jnp.mean(r, axis=1, keepdims=True)                # per-channel batch stats
    xc = r - mean
    var = jnp.mean(xc * xc, axis=1, keepdims=True)
    inv = jax.lax.rsqrt(var + 1e-5)
    o_ref[...] = (xc * inv) * g_ref[...] + be_ref[...]


def _mlp_head_kernel(x_ref, w5_ref, b5_ref, w6_ref, b6_ref, w7_ref, b7_ref, o_ref):
    h = jnp.dot(x_ref[...], w5_ref[...], preferred_element_type=jnp.float32) + b5_ref[...]
    h = jnp.dot(h, w6_ref[...], preferred_element_type=jnp.float32) + b6_ref[...]
    h = jnp.dot(h, w7_ref[...], preferred_element_type=jnp.float32) + b7_ref[...]
    o_ref[...] = h.astype(o_ref.dtype)


# ----------------------------------------------------------------------------
# pallas_call helper: one grid step, full-array VMEM blocks
# ----------------------------------------------------------------------------
def _full_block(shape):
    nd = len(shape)
    return pl.BlockSpec(shape, lambda i, _nd=nd: (0,) * _nd)


def _pc(kernel, out_shape, *inputs):
    return pl.pallas_call(
        kernel,
        out_shape=out_shape,
        grid=(1,),
        in_specs=[_full_block(a.shape) for a in inputs],
        out_specs=_full_block(out_shape.shape),
    )(*inputs)


# ----------------------------------------------------------------------------
# Wrapper-side layout plumbing (pure XLA reshapes / slices)
# ----------------------------------------------------------------------------
def _im2col(x, k):
    # x: (N, C, H, W) -> patches (N*Ho*Wo, C*k*k), row ordering (Cin, kh, kw)
    N, C, H, W = x.shape
    Ho, Wo = H - k + 1, W - k + 1
    cols = []
    for i in range(k):
        for j in range(k):
            cols.append(x[:, :, i:i + Ho, j:j + Wo])         # (N, C, Ho, Wo)
    p = jnp.stack(cols, axis=2)                              # (N, C, k*k, Ho, Wo)
    p = p.transpose(0, 3, 4, 1, 2).reshape(N * Ho * Wo, C * k * k)
    return p, Ho, Wo


def _pool_slabs(y):
    # y: (N, C, H, W) with even H, W  ->  four shifted slabs, each (C, N*Ho*Wo)
    N, C, H, W = y.shape
    Ho, Wo = H // 2, W // 2
    slabs = []
    for di in range(2):
        for dj in range(2):
            s = y[:, :, di::2, dj::2]                        # (N, C, Ho, Wo)
            slabs.append(s.transpose(1, 0, 2, 3).reshape(C, N * Ho * Wo))
    return slabs, Ho, Wo


# ----------------------------------------------------------------------------
# LeNet forward
# ----------------------------------------------------------------------------
def lenet_forward(x, p):
    N = x.shape[0]
    k = 5

    # --- conv1 (im2col + MXU matmul) -----------------------------------------
    n1 = p["w1"].shape[0]
    patches1, H1, W1 = _im2col(x, k)                         # (N*24*24, 25)
    w1m = p["w1"].reshape(n1, -1).T                          # (25, n1)
    y1 = _pc(_matmul_bias_kernel,
             jax.ShapeDtypeStruct((patches1.shape[0], n1), jnp.float32),
             patches1, w1m, p["b1"].reshape(1, n1))
    y1 = y1.reshape(N, H1, W1, n1).transpose(0, 3, 1, 2)     # (N, n1, 24, 24)

    # --- maxpool2 + relu + bn1 (fused) ---------------------------------------
    slabs1, Hp, Wp = _pool_slabs(y1)
    z1 = _pc(_pool_relu_bn_kernel,
             jax.ShapeDtypeStruct((n1, N * Hp * Wp), jnp.float32),
             *slabs1, p["g1"].reshape(n1, 1), p["be1"].reshape(n1, 1))
    z1 = z1.reshape(n1, N, Hp, Wp).transpose(1, 0, 2, 3)     # (N, n1, 12, 12)

    # --- conv3 ---------------------------------------------------------------
    n2 = p["w2"].shape[0]
    patches2, H2, W2 = _im2col(z1, k)                        # (N*8*8, n1*25)
    w2m = p["w2"].reshape(n2, -1).T
    y2 = _pc(_matmul_bias_kernel,
             jax.ShapeDtypeStruct((patches2.shape[0], n2), jnp.float32),
             patches2, w2m, p["b2"].reshape(1, n2))
    y2 = y2.reshape(N, H2, W2, n2).transpose(0, 3, 1, 2)     # (N, n2, 8, 8)

    # --- maxpool2 + relu + bn2 (fused) ---------------------------------------
    slabs2, Hq, Wq = _pool_slabs(y2)
    z2 = _pc(_pool_relu_bn_kernel,
             jax.ShapeDtypeStruct((n2, N * Hq * Wq), jnp.float32),
             *slabs2, p["g2"].reshape(n2, 1), p["be2"].reshape(n2, 1))
    z2 = z2.reshape(n2, N, Hq, Wq).transpose(1, 0, 2, 3)     # (N, n2, 4, 4)

    # --- flatten + fc5 -> fc6 -> out7 (fused head) ---------------------------
    flat = z2.reshape(N, n2 * Hq * Wq)                       # (N, n2*4*4)
    out = _pc(_mlp_head_kernel,
              jax.ShapeDtypeStruct((N, p["w7"].shape[0]), jnp.float32),
              flat,
              p["w5"].T, p["b5"].reshape(1, -1),
              p["w6"].T, p["b6"].reshape(1, -1),
              p["w7"].T, p["b7"].reshape(1, -1))
    return out


# ----------------------------------------------------------------------------
# Pure-JAX reference (for correctness check)
# ----------------------------------------------------------------------------
def _bn_ref(y, g, b, eps=1e-5):
    mean = y.mean(axis=(0, 2, 3), keepdims=True)
    var = ((y - mean) ** 2).mean(axis=(0, 2, 3), keepdims=True)
    return (y - mean) / jnp.sqrt(var + eps) * g.reshape(1, -1, 1, 1) + b.reshape(1, -1, 1, 1)


def lenet_reference(x, p):
    dn = ("NCHW", "OIHW", "NCHW")
    y = jax.lax.conv_general_dilated(x, p["w1"], (1, 1), "VALID", dimension_numbers=dn)
    y = y + p["b1"].reshape(1, -1, 1, 1)
    y = jax.lax.reduce_window(y, -jnp.inf, jax.lax.max, (1, 1, 2, 2), (1, 1, 2, 2), "VALID")
    y = jnp.maximum(y, 0.0)
    y = _bn_ref(y, p["g1"], p["be1"])
    y = jax.lax.conv_general_dilated(y, p["w2"], (1, 1), "VALID", dimension_numbers=dn)
    y = y + p["b2"].reshape(1, -1, 1, 1)
    y = jax.lax.reduce_window(y, -jnp.inf, jax.lax.max, (1, 1, 2, 2), (1, 1, 2, 2), "VALID")
    y = jnp.maximum(y, 0.0)
    y = _bn_ref(y, p["g2"], p["be2"])
    flat = y.reshape(y.shape[0], -1)
    h = flat @ p["w5"].T + p["b5"]
    h = h @ p["w6"].T + p["b6"]
    return h @ p["w7"].T + p["b7"]


# ----------------------------------------------------------------------------
# Parameter init
# ----------------------------------------------------------------------------
def init_params(key, nodes1=6, nodes2=16, fc1=120, fc2=84):
    ks = jax.random.split(key, 6)
    return {
        "w1": jax.random.normal(ks[0], (nodes1, 1, 5, 5), jnp.float32) * 0.1,
        "b1": jax.random.normal(ks[1], (nodes1,), jnp.float32) * 0.1,
        "g1": jnp.ones((nodes1,), jnp.float32),
        "be1": jnp.zeros((nodes1,), jnp.float32),
        "w2": jax.random.normal(ks[2], (nodes2, nodes1, 5, 5), jnp.float32) * 0.1,
        "b2": jax.random.normal(ks[3], (nodes2,), jnp.float32) * 0.1,
        "g2": jnp.ones((nodes2,), jnp.float32),
        "be2": jnp.zeros((nodes2,), jnp.float32),
        "w5": jax.random.normal(ks[4], (fc1, nodes2 * 4 * 4), jnp.float32) * 0.05,
        "b5": jnp.zeros((fc1,), jnp.float32),
        "w6": jax.random.normal(ks[5], (fc2, fc1), jnp.float32) * 0.05,
        "b6": jnp.zeros((fc2,), jnp.float32),
        "w7": jax.random.normal(jax.random.fold_in(key, 7), (10, fc2), jnp.float32) * 0.05,
        "b7": jnp.zeros((10,), jnp.float32),
    }


if __name__ == "__main__":
    key = jax.random.PRNGKey(0)
    kx, kp = jax.random.split(key)
    # LeNet geometry implies 1x28x28 input (two conv5+pool2 stages -> 4x4 feature map).
    x = jax.random.normal(kx, (2, 1, 28, 28), dtype=jnp.float32)
    params = init_params(kp, nodes1=6, nodes2=16, fc1=120, fc2=84)

    fwd = jax.jit(lenet_forward)
    out = fwd(x, params)
    jax.block_until_ready(out)

    assert out.shape == (2, 10) and out.dtype == jnp.float32
    assert bool(jnp.all(jnp.isfinite(out)))

    ref = lenet_reference(x, params)
    jax.block_until_ready(ref)
    max_err = float(jnp.max(jnp.abs(out - ref)))
    assert bool(jnp.allclose(out, ref, rtol=1e-2, atol=1e-2)), f"max abs err {max_err}"

    # TODO(synk): Fisher backward hooks / running_fisher accumulation are backward-pass
    # bookkeeping and are not part of the forward computation implemented here.
    print("KERNEL_OK")
</pallas_src>

<mosaic_0001>
module attributes {stable_mosaic.version = 11 : i64} {
  func.func @_matmul_bias_kernel(%arg0: i32, %arg1: memref<1152x25xf32, #tpu.memory_space<vmem>>, %arg2: memref<25x6xf32, #tpu.memory_space<vmem>>, %arg3: memref<1x6xf32, #tpu.memory_space<vmem>>, %arg4: memref<1152x6xf32, #tpu.memory_space<vmem>>) attributes {dimension_semantics = [#tpu.dimension_semantics<arbitrary>], iteration_bounds = array<i64: 1>, scalar_prefetch = 0 : i64, scratch_operands = 0 : i64, tpu.core_type = #tpu.core_type<tc>, window_params = [{pipeline_mode = #tpu.pipeline_mode<synchronous>, transform_indices = @transform_0, window_bounds = array<i64: 1152, 25>}, {pipeline_mode = #tpu.pipeline_mode<synchronous>, transform_indices = @transform_1, window_bounds = array<i64: 25, 6>}, {pipeline_mode = #tpu.pipeline_mode<synchronous>, transform_indices = @transform_2, window_bounds = array<i64: 1, 6>}, {pipeline_mode = #tpu.pipeline_mode<synchronous>, transform_indices = @transform_3, window_bounds = array<i64: 1152, 6>}]} {
    %c0 = arith.constant 0 : index
    %c0_0 = arith.constant 0 : index
    %0 = vector.load %arg1[%c0, %c0_0] : memref<1152x25xf32, #tpu.memory_space<vmem>>, vector<1152x25xf32>
    %c0_1 = arith.constant 0 : index
    %c0_2 = arith.constant 0 : index
    %1 = vector.load %arg2[%c0_1, %c0_2] : memref<25x6xf32, #tpu.memory_space<vmem>>, vector<25x6xf32>
    %cst = arith.constant dense<0.000000e+00> : vector<1152x6xf32>
    %2 = tpu.matmul %0, %1, %cst {dimension_numbers = #tpu.dot_dimension_numbers<[1], [0], [0], [1], [0, 0, 1, 1], [], []>} : vector<1152x25xf32>, vector<25x6xf32>, vector<1152x6xf32> -> vector<1152x6xf32>
    %c0_3 = arith.constant 0 : index
    %c0_4 = arith.constant 0 : index
    %3 = vector.load %arg3[%c0_3, %c0_4] : memref<1x6xf32, #tpu.memory_space<vmem>>, vector<1x6xf32>
    %4 = vector.broadcast %3 : vector<1x6xf32> to vector<1152x6xf32>
    %5 = arith.addf %2, %4 : vector<1152x6xf32>
    %c0_5 = arith.constant 0 : index
    %c0_6 = arith.constant 0 : index
    %6 = vector.load %arg4[%c0_5, %c0_6] : memref<1152x6xf32, #tpu.memory_space<vmem>>, vector<1152x6xf32>
    tpu.vector_store %arg4[%c0_5, %c0_6], %5 {strides = array<i32>} : memref<1152x6xf32, #tpu.memory_space<vmem>>, vector<1152x6xf32>,
    return
  }
  func.func @transform_0(%arg0: i32) -> (i32, i32) {
    %c0_i32 = arith.constant 0 : i32
    %c0_i32_0 = arith.constant 0 : i32
    %c0_i32_1 = arith.constant 0 : i32
    return %c0_i32, %c0_i32_0 : i32, i32
  }
  func.func @transform_1(%arg0: i32) -> (i32, i32) {
    %c0_i32 = arith.constant 0 : i32
    %c0_i32_0 = arith.constant 0 : i32
    %c0_i32_1 = arith.constant 0 : i32
    return %c0_i32, %c0_i32_0 : i32, i32
  }
  func.func @transform_2(%arg0: i32) -> (i32, i32) {
    %c0_i32 = arith.constant 0 : i32
    %c0_i32_0 = arith.constant 0 : i32
    %c0_i32_1 = arith.constant 0 : i32
    return %c0_i32, %c0_i32_0 : i32, i32
  }
  func.func @transform_3(%arg0: i32) -> (i32, i32) {
    %c0_i32 = arith.constant 0 : i32
    %c0_i32_0 = arith.constant 0 : i32
    %c0_i32_1 = arith.constant 0 : i32
    return %c0_i32, %c0_i32_0 : i32, i32
  }
}

module attributes {stable_mosaic.version = 11 : i64} {
  func.func @_pool_relu_bn_kernel(%arg0: i32, %arg1: memref<6x288xf32, #tpu.memory_space<vmem>>, %arg2: memref<6x288xf32, #tpu.memory_space<vmem>>, %arg3: memref<6x288xf32, #tpu.memory_space<vmem>>, %arg4: memref<6x288xf32, #tpu.memory_space<vmem>>, %arg5: memref<6x1xf32, #tpu.memory_space<vmem>>, %arg6: memref<6x1xf32, #tpu.memory_space<vmem>>, %arg7: memref<6x288xf32, #tpu.memory_space<vmem>>) attributes {dimension_semantics = [#tpu.dimension_semantics<arbitrary>], iteration_bounds = array<i64: 1>, scalar_prefetch = 0 : i64, scratch_operands = 0 : i64, tpu.core_type = #tpu.core_type<tc>, window_params = [{pipeline_mode = #tpu.pipeline_mode<synchronous>, transform_indices = @transform_0, window_bounds = array<i64: 6, 288>}, {pipeline_mode = #tpu.pipeline_mode<synchronous>, transform_indices = @transform_1, window_bounds = array<i64: 6, 288>}, {pipeline_mode = #tpu.pipeline_mode<synchronous>, transform_indices = @transform_2, window_bounds = array<i64: 6, 288>}, {pipeline_mode = #tpu.pipeline_mode<synchronous>, transform_indices = @transform_3, window_bounds = array<i64: 6, 288>}, {pipeline_mode = #tpu.pipeline_mode<synchronous>, transform_indices = @transform_4, window_bounds = array<i64: 6, 1>}, {pipeline_mode = #tpu.pipeline_mode<synchronous>, transform_indices = @transform_5, window_bounds = array<i64: 6, 1>}, {pipeline_mode = #tpu.pipeline_mode<synchronous>, transform_indices = @transform_6, window_bounds = array<i64: 6, 288>}]} {
    %c0 = arith.constant 0 : index
    %c0_0 = arith.constant 0 : index
    %0 = vector.load %arg1[%c0, %c0_0] : memref<6x288xf32, #tpu.memory_space<vmem>>, vector<6x288xf32>
    %c0_1 = arith.constant 0 : index
    %c0_2 = arith.constant 0 : index
    %1 = vector.load %arg2[%c0_1, %c0_2] : memref<6x288xf32, #tpu.memory_space<vmem>>, vector<6x288xf32>
    %2 = arith.maximumf %0, %1 : vector<6x288xf32>
    %c0_3 = arith.constant 0 : index
    %c0_4 = arith.constant 0 : index
    %3 = vector.load %arg3[%c0_3, %c0_4] : memref<6x288xf32, #tpu.memory_space<vmem>>, vector<6x288xf32>
    %c0_5 = arith.constant 0 : index
    %c0_6 = arith.constant 0 : index
    %4 = vector.load %arg4[%c0_5, %c0_6] : memref<6x288xf32, #tpu.memory_space<vmem>>, vector<6x288xf32>
    %5 = arith.maximumf %3, %4 : vector<6x288xf32>
    %6 = arith.maximumf %2, %5 : vector<6x288xf32>
    %cst = arith.constant 0.000000e+00 : f32
    %7 = vector.broadcast %cst : f32 to vector<6x288xf32>
    %8 = arith.maximumf %6, %7 : vector<6x288xf32>
    %cst_7 = arith.constant dense<0.000000e+00> : vector<6xf32>
    %9 = vector.multi_reduction <add>, %8, %cst_7 [1] : vector<6x288xf32> to vector<6xf32>
    %10 = vector.shape_cast %9 : vector<6xf32> to vector<6x1xf32>
    %cst_8 = arith.constant 2.880000e+02 : f32
    %11 = vector.broadcast %cst_8 : f32 to vector<6x1xf32>
    %12 = arith.divf %10, %11 : vector<6x1xf32>
    %13 = vector.broadcast %12 : vector<6x1xf32> to vector<6x288xf32>
    %14 = arith.subf %8, %13 : vector<6x288xf32>
    %15 = arith.mulf %14, %14 : vector<6x288xf32>
    %cst_9 = arith.constant dense<0.000000e+00> : vector<6xf32>
    %16 = vector.multi_reduction <add>, %15, %cst_9 [1] : vector<6x288xf32> to vector<6xf32>
    %17 = vector.shape_cast %16 : vector<6xf32> to vector<6x1xf32>
    %cst_10 = arith.constant 2.880000e+02 : f32
    %18 = vector.broadcast %cst_10 : f32 to vector<6x1xf32>
    %19 = arith.divf %17, %18 : vector<6x1xf32>
    %cst_11 = arith.constant 9.99999974E-6 : f32
    %20 = vector.broadcast %cst_11 : f32 to vector<6x1xf32>
    %21 = arith.addf %19, %20 : vector<6x1xf32>
    %22 = math.rsqrt %21 : vector<6x1xf32>
    %23 = vector.broadcast %22 : vector<6x1xf32> to vector<6x288xf32>
    %24 = arith.mulf %14, %23 : vector<6x288xf32>
    %c0_12 = arith.constant 0 : index
    %c0_13 = arith.constant 0 : index
    %25 = vector.load %arg5[%c0_12, %c0_13] : memref<6x1xf32, #tpu.memory_space<vmem>>, vector<6x1xf32>
    %26 = vector.broadcast %25 : vector<6x1xf32> to vector<6x288xf32>
    %27 = arith.mulf %24, %26 : vector<6x288xf32>
    %c0_14 = arith.constant 0 : index
    %c0_15 = arith.constant 0 : index
    %28 = vector.load %arg6[%c0_14, %c0_15] : memref<6x1xf32, #tpu.memory_space<vmem>>, vector<6x1xf32>
    %29 = vector.broadcast %28 : vector<6x1xf32> to vector<6x288xf32>
    %30 = arith.addf %27, %29 : vector<6x288xf32>
    %c0_16 = arith.constant 0 : index
    %c0_17 = arith.constant 0 : index
    %31 = vector.load %arg7[%c0_16, %c0_17] : memref<6x288xf32, #tpu.memory_space<vmem>>, vector<6x288xf32>
    tpu.vector_store %arg7[%c0_16, %c0_17], %30 {strides = array<i32>} : memref<6x288xf32, #tpu.memory_space<vmem>>, vector<6x288xf32>,
    return
  }
  func.func @transform_0(%arg0: i32) -> (i32, i32) {
    %c0_i32 = arith.constant 0 : i32
    %c0_i32_0 = arith.constant 0 : i32
    %c0_i32_1 = arith.constant 0 : i32
    return %c0_i32, %c0_i32_0 : i32, i32
  }
  func.func @transform_1(%arg0: i32) -> (i32, i32) {
    %c0_i32 = arith.constant 0 : i32
    %c0_i32_0 = arith.constant 0 : i32
    %c0_i32_1 = arith.constant 0 : i32
    return %c0_i32, %c0_i32_0 : i32, i32
  }
  func.func @transform_2(%arg0: i32) -> (i32, i32) {
    %c0_i32 = arith.constant 0 : i32
    %c0_i32_0 = arith.constant 0 : i32
    %c0_i32_1 = arith.constant 0 : i32
    return %c0_i32, %c0_i32_0 : i32, i32
  }
  func.func @transform_3(%arg0: i32) -> (i32, i32) {
    %c0_i32 = arith.constant 0 : i32
    %c0_i32_0 = arith.constant 0 : i32
    %c0_i32_1 = arith.constant 0 : i32
    return %c0_i32, %c0_i32_0 : i32, i32
  }
  func.func @transform_4(%arg0: i32) -> (i32, i32) {
    %c0_i32 = arith.constant 0 : i32
    %c0_i32_0 = arith.constant 0 : i32
    %c0_i32_1 = arith.constant 0 : i32
    return %c0_i32, %c0_i32_0 : i32, i32
  }
  func.func @transform_5(%arg0: i32) -> (i32, i32) {
    %c0_i32 = arith.constant 0 : i32
    %c0_i32_0 = arith.constant 0 : i32
    %c0_i32_1 = arith.constant 0 : i32
    return %c0_i32, %c0_i32_0 : i32, i32
  }
  func.func @transform_6(%arg0: i32) -> (i32, i32) {
    %c0_i32 = arith.constant 0 : i32
    %c0_i32_0 = arith.constant 0 : i32
    %c0_i32_1 = arith.constant 0 : i32
    return %c0_i32, %c0_i32_0 : i32, i32
  }
}

module attributes {stable_mosaic.version = 11 : i64} {
  func.func @_matmul_bias_kernel(%arg0: i32, %arg1: memref<128x150xf32, #tpu.memory_space<vmem>>, %arg2: memref<150x16xf32, #tpu.memory_space<vmem>>, %arg3: memref<1x16xf32, #tpu.memory_space<vmem>>, %arg4: memref<128x16xf32, #tpu.memory_space<vmem>>) attributes {dimension_semantics = [#tpu.dimension_semantics<arbitrary>], iteration_bounds = array<i64: 1>, scalar_prefetch = 0 : i64, scratch_operands = 0 : i64, tpu.core_type = #tpu.core_type<tc>, window_params = [{pipeline_mode = #tpu.pipeline_mode<synchronous>, transform_indices = @transform_0, window_bounds = array<i64: 128, 150>}, {pipeline_mode = #tpu.pipeline_mode<synchronous>, transform_indices = @transform_1, window_bounds = array<i64: 150, 16>}, {pipeline_mode = #tpu.pipeline_mode<synchronous>, transform_indices = @transform_2, window_bounds = array<i64: 1, 16>}, {pipeline_mode = #tpu.pipeline_mode<synchronous>, transform_indices = @transform_3, window_bounds = array<i64: 128, 16>}]} {
    %c0 = arith.constant 0 : index
    %c0_0 = arith.constant 0 : index
    %0 = vector.load %arg1[%c0, %c0_0] : memref<128x150xf32, #tpu.memory_space<vmem>>, vector<128x150xf32>
    %c0_1 = arith.constant 0 : index
    %c0_2 = arith.constant 0 : index
    %1 = vector.load %arg2[%c0_1, %c0_2] : memref<150x16xf32, #tpu.memory_space<vmem>>, vector<150x16xf32>
    %cst = arith.constant dense<0.000000e+00> : vector<128x16xf32>
    %2 = tpu.matmul %0, %1, %cst {dimension_numbers = #tpu.dot_dimension_numbers<[1], [0], [0], [1], [0, 0, 1, 1], [], []>} : vector<128x150xf32>, vector<150x16xf32>, vector<128x16xf32> -> vector<128x16xf32>
    %c0_3 = arith.constant 0 : index
    %c0_4 = arith.constant 0 : index
    %3 = vector.load %arg3[%c0_3, %c0_4] : memref<1x16xf32, #tpu.memory_space<vmem>>, vector<1x16xf32>
    %4 = vector.broadcast %3 : vector<1x16xf32> to vector<128x16xf32>
    %5 = arith.addf %2, %4 : vector<128x16xf32>
    %c0_5 = arith.constant 0 : index
    %c0_6 = arith.constant 0 : index
    %6 = vector.load %arg4[%c0_5, %c0_6] : memref<128x16xf32, #tpu.memory_space<vmem>>, vector<128x16xf32>
    tpu.vector_store %arg4[%c0_5, %c0_6], %5 {strides = array<i32>} : memref<128x16xf32, #tpu.memory_space<vmem>>, vector<128x16xf32>,
    return
  }
  func.func @transform_0(%arg0: i32) -> (i32, i32) {
    %c0_i32 = arith.constant 0 : i32
    %c0_i32_0 = arith.constant 0 : i32
    %c0_i32_1 = arith.constant 0 : i32
    return %c0_i32, %c0_i32_0 : i32, i32
  }
  func.func @transform_1(%arg0: i32) -> (i32, i32) {
    %c0_i32 = arith.constant 0 : i32
    %c0_i32_0 = arith.constant 0 : i32
    %c0_i32_1 = arith.constant 0 : i32
    return %c0_i32, %c0_i32_0 : i32, i32
  }
  func.func @transform_2(%arg0: i32) -> (i32, i32) {
    %c0_i32 = arith.constant 0 : i32
    %c0_i32_0 = arith.constant 0 : i32
    %c0_i32_1 = arith.constant 0 : i32
    return %c0_i32, %c0_i32_0 : i32, i32
  }
  func.func @transform_3(%arg0: i32) -> (i32, i32) {
    %c0_i32 = arith.constant 0 : i32
    %c0_i32_0 = arith.constant 0 : i32
    %c0_i32_1 = arith.constant 0 : i32
    return %c0_i32, %c0_i32_0 : i32, i32
  }
}

module attributes {stable_mosaic.version = 11 : i64} {
  func.func @_pool_relu_bn_kernel(%arg0: i32, %arg1: memref<16x32xf32, #tpu.memory_space<vmem>>, %arg2: memref<16x32xf32, #tpu.memory_space<vmem>>, %arg3: memref<16x32xf32, #tpu.memory_space<vmem>>, %arg4: memref<16x32xf32, #tpu.memory_space<vmem>>, %arg5: memref<16x1xf32, #tpu.memory_space<vmem>>, %arg6: memref<16x1xf32, #tpu.memory_space<vmem>>, %arg7: memref<16x32xf32, #tpu.memory_space<vmem>>) attributes {dimension_semantics = [#tpu.dimension_semantics<arbitrary>], iteration_bounds = array<i64: 1>, scalar_prefetch = 0 : i64, scratch_operands = 0 : i64, tpu.core_type = #tpu.core_type<tc>, window_params = [{pipeline_mode = #tpu.pipeline_mode<synchronous>, transform_indices = @transform_0, window_bounds = array<i64: 16, 32>}, {pipeline_mode = #tpu.pipeline_mode<synchronous>, transform_indices = @transform_1, window_bounds = array<i64: 16, 32>}, {pipeline_mode = #tpu.pipeline_mode<synchronous>, transform_indices = @transform_2, window_bounds = array<i64: 16, 32>}, {pipeline_mode = #tpu.pipeline_mode<synchronous>, transform_indices = @transform_3, window_bounds = array<i64: 16, 32>}, {pipeline_mode = #tpu.pipeline_mode<synchronous>, transform_indices = @transform_4, window_bounds = array<i64: 16, 1>}, {pipeline_mode = #tpu.pipeline_mode<synchronous>, transform_indices = @transform_5, window_bounds = array<i64: 16, 1>}, {pipeline_mode = #tpu.pipeline_mode<synchronous>, transform_indices = @transform_6, window_bounds = array<i64: 16, 32>}]} {
    %c0 = arith.constant 0 : index
    %c0_0 = arith.constant 0 : index
    %0 = vector.load %arg1[%c0, %c0_0] : memref<16x32xf32, #tpu.memory_space<vmem>>, vector<16x32xf32>
    %c0_1 = arith.constant 0 : index
    %c0_2 = arith.constant 0 : index
    %1 = vector.load %arg2[%c0_1, %c0_2] : memref<16x32xf32, #tpu.memory_space<vmem>>, vector<16x32xf32>
    %2 = arith.maximumf %0, %1 : vector<16x32xf32>
    %c0_3 = arith.constant 0 : index
    %c0_4 = arith.constant 0 : index
    %3 = vector.load %arg3[%c0_3, %c0_4] : memref<16x32xf32, #tpu.memory_space<vmem>>, vector<16x32xf32>
    %c0_5 = arith.constant 0 : index
    %c0_6 = arith.constant 0 : index
    %4 = vector.load %arg4[%c0_5, %c0_6] : memref<16x32xf32, #tpu.memory_space<vmem>>, vector<16x32xf32>
    %5 = arith.maximumf %3, %4 : vector<16x32xf32>
    %6 = arith.maximumf %2, %5 : vector<16x32xf32>
    %cst = arith.constant 0.000000e+00 : f32
    %7 = vector.broadcast %cst : f32 to vector<16x32xf32>
    %8 = arith.maximumf %6, %7 : vector<16x32xf32>
    %cst_7 = arith.constant dense<0.000000e+00> : vector<16xf32>
    %9 = vector.multi_reduction <add>, %8, %cst_7 [1] : vector<16x32xf32> to vector<16xf32>
    %10 = vector.shape_cast %9 : vector<16xf32> to vector<16x1xf32>
    %cst_8 = arith.constant 3.200000e+01 : f32
    %11 = vector.broadcast %cst_8 : f32 to vector<16x1xf32>
    %12 = arith.divf %10, %11 : vector<16x1xf32>
    %13 = vector.broadcast %12 : vector<16x1xf32> to vector<16x32xf32>
    %14 = arith.subf %8, %13 : vector<16x32xf32>
    %15 = arith.mulf %14, %14 : vector<16x32xf32>
    %cst_9 = arith.constant dense<0.000000e+00> : vector<16xf32>
    %16 = vector.multi_reduction <add>, %15, %cst_9 [1] : vector<16x32xf32> to vector<16xf32>
    %17 = vector.shape_cast %16 : vector<16xf32> to vector<16x1xf32>
    %cst_10 = arith.constant 3.200000e+01 : f32
    %18 = vector.broadcast %cst_10 : f32 to vector<16x1xf32>
    %19 = arith.divf %17, %18 : vector<16x1xf32>
    %cst_11 = arith.constant 9.99999974E-6 : f32
    %20 = vector.broadcast %cst_11 : f32 to vector<16x1xf32>
    %21 = arith.addf %19, %20 : vector<16x1xf32>
    %22 = math.rsqrt %21 : vector<16x1xf32>
    %23 = vector.broadcast %22 : vector<16x1xf32> to vector<16x32xf32>
    %24 = arith.mulf %14, %23 : vector<16x32xf32>
    %c0_12 = arith.constant 0 : index
    %c0_13 = arith.constant 0 : index
    %25 = vector.load %arg5[%c0_12, %c0_13] : memref<16x1xf32, #tpu.memory_space<vmem>>, vector<16x1xf32>
    %26 = vector.broadcast %25 : vector<16x1xf32> to vector<16x32xf32>
    %27 = arith.mulf %24, %26 : vector<16x32xf32>
    %c0_14 = arith.constant 0 : index
    %c0_15 = arith.constant 0 : index
    %28 = vector.load %arg6[%c0_14, %c0_15] : memref<16x1xf32, #tpu.memory_space<vmem>>, vector<16x1xf32>
    %29 = vector.broadcast %28 : vector<16x1xf32> to vector<16x32xf32>
    %30 = arith.addf %27, %29 : vector<16x32xf32>
    %c0_16 = arith.constant 0 : index
    %c0_17 = arith.constant 0 : index
    %31 = vector.load %arg7[%c0_16, %c0_17] : memref<16x32xf32, #tpu.memory_space<vmem>>, vector<16x32xf32>
    tpu.vector_store %arg7[%c0_16, %c0_17], %30 {strides = array<i32>} : memref<16x32xf32, #tpu.memory_space<vmem>>, vector<16x32xf32>,
    return
  }
  func.func @transform_0(%arg0: i32) -> (i32, i32) {
    %c0_i32 = arith.constant 0 : i32
    %c0_i32_0 = arith.constant 0 : i32
    %c0_i32_1 = arith.constant 0 : i32
    return %c0_i32, %c0_i32_0 : i32, i32
  }
  func.func @transform_1(%arg0: i32) -> (i32, i32) {
    %c0_i32 = arith.constant 0 : i32
    %c0_i32_0 = arith.constant 0 : i32
    %c0_i32_1 = arith.constant 0 : i32
    return %c0_i32, %c0_i32_0 : i32, i32
  }
  func.func @transform_2(%arg0: i32) -> (i32, i32) {
    %c0_i32 = arith.constant 0 : i32
    %c0_i32_0 = arith.constant 0 : i32
    %c0_i32_1 = arith.constant 0 : i32
    return %c0_i32, %c0_i32_0 : i32, i32
  }
  func.func @transform_3(%arg0: i32) -> (i32, i32) {
    %c0_i32 = arith.constant 0 : i32
    %c0_i32_0 = arith.constant 0 : i32
    %c0_i32_1 = arith.constant 0 : i32
    return %c0_i32, %c0_i32_0 : i32, i32
  }
  func.func @transform_4(%arg0: i32) -> (i32, i32) {
    %c0_i32 = arith.constant 0 : i32
    %c0_i32_0 = arith.constant 0 : i32
    %c0_i32_1 = arith.constant 0 : i32
    return %c0_i32, %c0_i32_0 : i32, i32
  }
  func.func @transform_5(%arg0: i32) -> (i32, i32) {
    %c0_i32 = arith.constant 0 : i32
    %c0_i32_0 = arith.constant 0 : i32
    %c0_i32_1 = arith.constant 0 : i32
    return %c0_i32, %c0_i32_0 : i32, i32
  }
  func.func @transform_6(%arg0: i32) -> (i32, i32) {
    %c0_i32 = arith.constant 0 : i32
    %c0_i32_0 = arith.constant 0 : i32
    %c0_i32_1 = arith.constant 0 : i32
    return %c0_i32, %c0_i32_0 : i32, i32
  }
}

module attributes {stable_mosaic.version = 11 : i64} {
  func.func @_mlp_head_kernel(%arg0: i32, %arg1: memref<2x256xf32, #tpu.memory_space<vmem>>, %arg2: memref<256x120xf32, #tpu.memory_space<vmem>>, %arg3: memref<1x120xf32, #tpu.memory_space<vmem>>, %arg4: memref<120x84xf32, #tpu.memory_space<vmem>>, %arg5: memref<1x84xf32, #tpu.memory_space<vmem>>, %arg6: memref<84x10xf32, #tpu.memory_space<vmem>>, %arg7: memref<1x10xf32, #tpu.memory_space<vmem>>, %arg8: memref<2x10xf32, #tpu.memory_space<vmem>>) attributes {dimension_semantics = [#tpu.dimension_semantics<arbitrary>], iteration_bounds = array<i64: 1>, scalar_prefetch = 0 : i64, scratch_operands = 0 : i64, tpu.core_type = #tpu.core_type<tc>, window_params = [{pipeline_mode = #tpu.pipeline_mode<synchronous>, transform_indices = @transform_0, window_bounds = array<i64: 2, 256>}, {pipeline_mode = #tpu.pipeline_mode<synchronous>, transform_indices = @transform_1, window_bounds = array<i64: 256, 120>}, {pipeline_mode = #tpu.pipeline_mode<synchronous>, transform_indices = @transform_2, window_bounds = array<i64: 1, 120>}, {pipeline_mode = #tpu.pipeline_mode<synchronous>, transform_indices = @transform_3, window_bounds = array<i64: 120, 84>}, {pipeline_mode = #tpu.pipeline_mode<synchronous>, transform_indices = @transform_4, window_bounds = array<i64: 1, 84>}, {pipeline_mode = #tpu.pipeline_mode<synchronous>, transform_indices = @transform_5, window_bounds = array<i64: 84, 10>}, {pipeline_mode = #tpu.pipeline_mode<synchronous>, transform_indices = @transform_6, window_bounds = array<i64: 1, 10>}, {pipeline_mode = #tpu.pipeline_mode<synchronous>, transform_indices = @transform_7, window_bounds = array<i64: 2, 10>}]} {
    %c0 = arith.constant 0 : index
    %c0_0 = arith.constant 0 : index
    %0 = vector.load %arg1[%c0, %c0_0] : memref<2x256xf32, #tpu.memory_space<vmem>>, vector<2x256xf32>
    %c0_1 = arith.constant 0 : index
    %c0_2 = arith.constant 0 : index
    %1 = vector.load %arg2[%c0_1, %c0_2] : memref<256x120xf32, #tpu.memory_space<vmem>>, vector<256x120xf32>
    %cst = arith.constant dense<0.000000e+00> : vector<2x120xf32>
    %2 = tpu.matmul %0, %1, %cst {dimension_numbers = #tpu.dot_dimension_numbers<[1], [0], [0], [1], [0, 0, 1, 1], [], []>} : vector<2x256xf32>, vector<256x120xf32>, vector<2x120xf32> -> vector<2x120xf32>
    %c0_3 = arith.constant 0 : index
    %c0_4 = arith.constant 0 : index
    %3 = vector.load %arg3[%c0_3, %c0_4] : memref<1x120xf32, #tpu.memory_space<vmem>>, vector<1x120xf32>
    %4 = vector.broadcast %3 : vector<1x120xf32> to vector<2x120xf32>
    %5 = arith.addf %2, %4 : vector<2x120xf32>
    %c0_5 = arith.constant 0 : index
    %c0_6 = arith.constant 0 : index
    %6 = vector.load %arg4[%c0_5, %c0_6] : memref<120x84xf32, #tpu.memory_space<vmem>>, vector<120x84xf32>
    %cst_7 = arith.constant dense<0.000000e+00> : vector<2x84xf32>
    %7 = tpu.matmul %5, %6, %cst_7 {dimension_numbers = #tpu.dot_dimension_numbers<[1], [0], [0], [1], [0, 0, 1, 1], [], []>} : vector<2x120xf32>, vector<120x84xf32>, vector<2x84xf32> -> vector<2x84xf32>
    %c0_8 = arith.constant 0 : index
    %c0_9 = arith.constant 0 : index
    %8 = vector.load %arg5[%c0_8, %c0_9] : memref<1x84xf32, #tpu.memory_space<vmem>>, vector<1x84xf32>
    %9 = vector.broadcast %8 : vector<1x84xf32> to vector<2x84xf32>
    %10 = arith.addf %7, %9 : vector<2x84xf32>
    %c0_10 = arith.constant 0 : index
    %c0_11 = arith.constant 0 : index
    %11 = vector.load %arg6[%c0_10, %c0_11] : memref<84x10xf32, #tpu.memory_space<vmem>>, vector<84x10xf32>
    %cst_12 = arith.constant dense<0.000000e+00> : vector<2x10xf32>
    %12 = tpu.matmul %10, %11, %cst_12 {dimension_numbers = #tpu.dot_dimension_numbers<[1], [0], [0], [1], [0, 0, 1, 1], [], []>} : vector<2x84xf32>, vector<84x10xf32>, vector<2x10xf32> -> vector<2x10xf32>
    %c0_13 = arith.constant 0 : index
    %c0_14 = arith.constant 0 : index
    %13 = vector.load %arg7[%c0_13, %c0_14] : memref<1x10xf32, #tpu.memory_space<vmem>>, vector<1x10xf32>
    %14 = vector.broadcast %13 : vector<1x10xf32> to vector<2x10xf32>
    %15 = arith.addf %12, %14 : vector<2x10xf32>
    %c0_15 = arith.constant 0 : index
    %c0_16 = arith.constant 0 : index
    %16 = vector.load %arg8[%c0_15, %c0_16] : memref<2x10xf32, #tpu.memory_space<vmem>>, vector<2x10xf32>
    tpu.vector_store %arg8[%c0_15, %c0_16], %15 {strides = array<i32>} : memref<2x10xf32, #tpu.memory_space<vmem>>, vector<2x10xf32>,
    return
  }
  func.func @transform_0(%arg0: i32) -> (i32, i32) {
    %c0_i32 = arith.constant 0 : i32
    %c0_i32_0 = arith.constant 0 : i32
    %c0_i32_1 = arith.constant 0 : i32
    return %c0_i32, %c0_i32_0 : i32, i32
  }
  func.func @transform_1(%arg0: i32) -> (i32, i32) {
    %c0_i32 = arith.constant 0 : i32
    %c0_i32_0 = arith.constant 0 : i32
    %c0_i32_1 = arith.constant 0 : i32
    return %c0_i32, %c0_i32_0 : i32, i32
  }
  func.func @transform_2(%arg0: i32) -> (i32, i32) {
    %c0_i32 = arith.constant 0 : i32
    %c0_i32_0 = arith.constant 0 : i32
    %c0_i32_1 = arith.constant 0 : i32
    return %c0_i32, %c0_i32_0 : i32, i32
  }
  func.func @transform_3(%arg0: i32) -> (i32, i32) {
    %c0_i32 = arith.constant 0 : i32
    %c0_i32_0 = arith.constant 0 : i32
    %c0_i32_1 = arith.constant 0 : i32
    return %c0_i32, %c0_i32_0 : i32, i32
  }
  func.func @transform_4(%arg0: i32) -> (i32, i32) {
    %c0_i32 = arith.constant 0 : i32
    %c0_i32_0 = arith.constant 0 : i32
    %c0_i32_1 = arith.constant 0 : i32
    return %c0_i32, %c0_i32_0 : i32, i32
  }
  func.func @transform_5(%arg0: i32) -> (i32, i32) {
    %c0_i32 = arith.constant 0 : i32
    %c0_i32_0 = arith.constant 0 : i32
    %c0_i32_1 = arith.constant 0 : i32
    return %c0_i32, %c0_i32_0 : i32, i32
  }
  func.func @transform_6(%arg0: i32) -> (i32, i32) {
    %c0_i32 = arith.constant 0 : i32
    %c0_i32_0 = arith.constant 0 : i32
    %c0_i32_1 = arith.constant 0 : i32
    return %c0_i32, %c0_i32_0 : i32, i32
  }
  func.func @transform_7(%arg0: i32) -> (i32, i32) {
    %c0_i32 = arith.constant 0 : i32
    %c0_i32_0 = arith.constant 0 : i32
    %c0_i32_1 = arith.constant 0 : i32
    return %c0_i32, %c0_i32_0 : i32, i32
  }
}

</mosaic_0001>

<bundles_post_ra>
// kernel: lenet_forward.5
= control target key start
LH: loop header
LB: loop body
LE: loop exit
PB: predicated region body
PF: predicated region fallthrough
CT: control target
= control target key end

     0   :  { %vm602_vm0 = vcmask 1040384   ;;  %vm169_vm1 = vcmask 203776   ;;  %vm1391_vm2 = vcmask 48128   ;;  %s3399_s1 = inlined_call_operand.vmem [shape: f32[25,6], index: 1, kind: input, shape index: {}]   ;;  %s3400_s0 = inlined_call_operand.vmem [shape: f32[1152,25], index: 0, kind: input, shape index: {}]   ;;  %s3401_s2 = inlined_call_operand.vmem [shape: f32[1,6], index: 2, kind: input, shape index: {}]   ;;  %s3402_s3 = inlined_call_operand.vmem [shape: f32[1152,6], index: 3, kind: output, shape index: {}]  }
   0x1   :  { %v161_v0 = vld [vmem:[%s3399_s1 + $0x18] sm:$0x1]  ;;  %v160_v1 = vld [vmem:[%s3399_s1 + $0x10] sm:$0xff]  ;;  %v159_v2 = vld [vmem:[%s3399_s1 + $0x8] sm:$0xff] }
   0x2   :  { %1834 = vmatprep.subr.msk.mxu0 %vm602_vm0, %v161_v0  ;;  %2058 = vmatprep.subr.msk.mxu1 %vm602_vm0, %v161_v0  ;;  %v158_v3 = vld [vmem:[%s3399_s1] sm:$0xff]  ;;  %v15_v6 = vld [vmem:[%s3400_s0 + $0x8] sm:$0xff]  ;;  %v16_v8 = vld [vmem:[%s3400_s0 + $0x10] sm:$0xff] }
   0x3   :  { %1835 = vmatpush3.msk.msra.mxu0 %vm602_vm0, %v161_v0  ;;  %2062 = vmatpush3.msk.msra.mxu1 %vm602_vm0, %v161_v0  ;;  %v14_v4 = vld [vmem:[%s3400_s0] sm:$0xff]  ;;  %v87_v7 = vld [vmem:[%s3400_s0 + $0x248] sm:$0xff]  ;;  %v88_v9 = vld [vmem:[%s3400_s0 + $0x250] sm:$0xff] }
   0x4   :  { %1836 = vmatprep.subr.mxu0 %v160_v1  ;;  %2059 = vmatprep.subr.mxu1 %v160_v1  ;;  %v86_v5 = vld [vmem:[%s3400_s0 + $0x240] sm:$0xff]  ;;  %v17_v10 = vld [vmem:[%s3400_s0 + $0x18] sm:$0xff]  ;;  %v19_v14 = vld [vmem:[%s3400_s0 + $0x28] sm:$0xff] }
   0x5   :  { %1837 = vmatpush3.msra.mxu0 %v160_v1  ;;  %2063 = vmatpush3.msra.mxu1 %v160_v1  ;;  %v89_v11 = vld [vmem:[%s3400_s0 + $0x258] sm:$0xff]  ;;  %v18_v12 = vld [vmem:[%s3400_s0 + $0x20] sm:$0xff]  ;;  %v91_v15 = vld [vmem:[%s3400_s0 + $0x268] sm:$0xff] }
   0x6   :  { %1838 = vmatprep.subr.mxu0 %v159_v2  ;;  %2060 = vmatprep.subr.mxu1 %v159_v2  ;;  %v90_v13 = vld [vmem:[%s3400_s0 + $0x260] sm:$0xff]  ;;  %v20_v16 = vld [vmem:[%s3400_s0 + $0x30] sm:$0xff]  ;;  %v21_v18 = vld [vmem:[%s3400_s0 + $0x38] sm:$0xff] }
   0x7   :  { %1839 = vmatpush3.msra.mxu0 %v159_v2  ;;  %2064 = vmatpush3.msra.mxu1 %v159_v2  ;;  %v92_v17 = vld [vmem:[%s3400_s0 + $0x270] sm:$0xff]  ;;  %v93_v19 = vld [vmem:[%s3400_s0 + $0x278] sm:$0xff]  ;;  %v22_v20 = vld [vmem:[%s3400_s0 + $0x40] sm:$0xff] }
   0x8   :  { %1840 = vmatprep.subr.mxu0 %v158_v3  ;;  %2061 = vmatprep.subr.mxu1 %v158_v3  ;;  %v94_v21 = vld [vmem:[%s3400_s0 + $0x280] sm:$0xff]  ;;  %v23_v22 = vld [vmem:[%s3400_s0 + $0x48] sm:$0xff]  ;;  %v24_v24 = vld [vmem:[%s3400_s0 + $0x50] sm:$0xff] }
   0x9   :  { %1841 = vmatpush3.msra.mxu0 %v158_v3  ;;  %2065 = vmatpush3.msra.mxu1 %v158_v3  ;;  %v95_v23 = vld [vmem:[%s3400_s0 + $0x288] sm:$0xff]  ;;  %v96_v25 = vld [vmem:[%s3400_s0 + $0x290] sm:$0xff]  ;;  %v25_v26 = vld [vmem:[%s3400_s0 + $0x58] sm:$0xff] }
   0xa   :  { %1842 = vmatprep.mubr.msk.f32.mxu0 %vm169_vm1, %v14_v4  ;;  %1950 = vmatprep.mubr.msk.f32.mxu1 %vm169_vm1, %v86_v5  ;;  %v97_v27 = vld [vmem:[%s3400_s0 + $0x298] sm:$0xff]  ;;  %v26_v28 = vld [vmem:[%s3400_s0 + $0x60] sm:$0xff]  ;;  %v27_v30 = vld [vmem:[%s3400_s0 + $0x68] sm:$0xff] }
   0xb   :  { %1843 = vmatmul.mubr.msk.f32.vlgmr.msra.gmra.mxu0 %vm169_vm1, %v15_v6  ;;  %1951 = vmatmul.mubr.msk.f32.vlgmr.msra.gmra.mxu1 %vm169_vm1, %v87_v7  ;;  %v98_v29 = vld [vmem:[%s3400_s0 + $0x2a0] sm:$0xff]  ;;  %v99_v31 = vld [vmem:[%s3400_s0 + $0x2a8] sm:$0xff]  ;;  %v28_v32 = vld [vmem:[%s3400_s0 + $0x70] sm:$0xff] }
   0xc   :  { %1845 = vmatprep.mubr.msk.f32.mxu0 %vm169_vm1, %v16_v8  ;;  %1953 = vmatprep.mubr.msk.f32.mxu1 %vm169_vm1, %v88_v9  ;;  %v100_v33 = vld [vmem:[%s3400_s0 + $0x2b0] sm:$0xff]  ;;  %v29_v34 = vld [vmem:[%s3400_s0 + $0x78] sm:$0xff]  ;;  %v30_v36 = vld [vmem:[%s3400_s0 + $0x80] sm:$0xff] }
   0xd   :  { %v101_v35 = vld [vmem:[%s3400_s0 + $0x2b8] sm:$0xff]  ;;  %v102_v37 = vld [vmem:[%s3400_s0 + $0x2c0] sm:$0xff]  ;;  %v31_v38 = vld [vmem:[%s3400_s0 + $0x88] sm:$0xff] }
   0xe   :  { %v103_v39 = vld [vmem:[%s3400_s0 + $0x2c8] sm:$0xff]  ;;  %v32_v40 = vld [vmem:[%s3400_s0 + $0x90] sm:$0xff]  ;;  %v33_v42 = vld [vmem:[%s3400_s0 + $0x98] sm:$0xff] }
   0xf   :  { %1846 = vmatmul.mubr.msk.f32.gmra.mxu0 %vm169_vm1, %v17_v10  ;;  %1954 = vmatmul.mubr.msk.f32.gmra.mxu1 %vm169_vm1, %v89_v11  ;;  %v104_v41 = vld [vmem:[%s3400_s0 + $0x2d0] sm:$0xff]  ;;  %v105_v43 = vld [vmem:[%s3400_s0 + $0x2d8] sm:$0xff]  ;;  %v34_v44 = vld [vmem:[%s3400_s0 + $0xa0] sm:$0xff] }
  0x10   :  { %1848 = vmatprep.mubr.msk.f32.mxu0 %vm169_vm1, %v18_v12  ;;  %1956 = vmatprep.mubr.msk.f32.mxu1 %vm169_vm1, %v90_v13  ;;  %v106_v45 = vld [vmem:[%s3400_s0 + $0x2e0] sm:$0xff]  ;;  %v35_v46 = vld [vmem:[%s3400_s0 + $0xa8] sm:$0xff]  ;;  %v36_v48 = vld [vmem:[%s3400_s0 + $0xb0] sm:$0xff] }
  0x11   :  { %v107_v47 = vld [vmem:[%s3400_s0 + $0x2e8] sm:$0xff]  ;;  %v108_v49 = vld [vmem:[%s3400_s0 + $0x2f0] sm:$0xff]  ;;  %v37_v50 = vld [vmem:[%s3400_s0 + $0xb8] sm:$0xff] }
  0x12   :  { %v109_v51 = vld [vmem:[%s3400_s0 + $0x2f8] sm:$0xff]  ;;  %v38_v52 = vld [vmem:[%s3400_s0 + $0xc0] sm:$0xff]  ;;  %v39_v54 = vld [vmem:[%s3400_s0 + $0xc8] sm:$0xff] }
  0x13   :  { %1849 = vmatmul.mubr.msk.f32.gmra.mxu0 %vm169_vm1, %v19_v14  ;;  %1957 = vmatmul.mubr.msk.f32.gmra.mxu1 %vm169_vm1, %v91_v15  ;;  %v110_v53 = vld [vmem:[%s3400_s0 + $0x300] sm:$0xff]  ;;  %v111_v55 = vld [vmem:[%s3400_s0 + $0x308] sm:$0xff]  ;;  %v40_v56 = vld [vmem:[%s3400_s0 + $0xd0] sm:$0xff] }
  0x14   :  { %1851 = vmatprep.mubr.msk.f32.mxu0 %vm169_vm1, %v20_v16  ;;  %1959 = vmatprep.mubr.msk.f32.mxu1 %vm169_vm1, %v92_v17  ;;  %v112_v57 = vld [vmem:[%s3400_s0 + $0x310] sm:$0xff]  ;;  %v41_v58 = vld [vmem:[%s3400_s0 + $0xd8] sm:$0xff]  ;;  %v42_v60 = vld [vmem:[%s3400_s0 + $0xe0] sm:$0xff] }
  0x15   :  { %v113_v59 = vld [vmem:[%s3400_s0 + $0x318] sm:$0xff]  ;;  %v114_v61 = vld [vmem:[%s3400_s0 + $0x320] sm:$0xff]  ;;  %v43_v62 = vld [vmem:[%s3400_s0 + $0xe8] sm:$0xff] }
  0x16   :  { %v115_v63 = vld [vmem:[%s3400_s0 + $0x328] sm:$0xff]  ;;  %v44_v0 = vld [vmem:[%s3400_s0 + $0xf0] sm:$0xff]  ;;  %v45_v2 = vld [vmem:[%s3400_s0 + $0xf8] sm:$0xff] }
  0x17   :  { %1852 = vmatmul.mubr.msk.f32.gmra.mxu0 %vm169_vm1, %v21_v18  ;;  %1960 = vmatmul.mubr.msk.f32.gmra.mxu1 %vm169_vm1, %v93_v19  ;;  %v116_v1 = vld [vmem:[%s3400_s0 + $0x330] sm:$0xff]  ;;  %v117_v3 = vld [vmem:[%s3400_s0 + $0x338] sm:$0xff]  ;;  %v46_v4 = vld [vmem:[%s3400_s0 + $0x100] sm:$0xff] }
  0x18   :  { %1854 = vmatprep.mubr.msk.f32.mxu0 %vm169_vm1, %v22_v20  ;;  %1962 = vmatprep.mubr.msk.f32.mxu1 %vm169_vm1, %v94_v21  ;;  %v118_v5 = vld [vmem:[%s3400_s0 + $0x340] sm:$0xff]  ;;  %v47_v6 = vld [vmem:[%s3400_s0 + $0x108] sm:$0xff]  ;;  %v48_v8 = vld [vmem:[%s3400_s0 + $0x110] sm:$0xff] }
  0x19   :  { %v119_v7 = vld [vmem:[%s3400_s0 + $0x348] sm:$0xff]  ;;  %v120_v9 = vld [vmem:[%s3400_s0 + $0x350] sm:$0xff]  ;;  %v49_v10 = vld [vmem:[%s3400_s0 + $0x118] sm:$0xff] }
  0x1a   :  { %v121_v11 = vld [vmem:[%s3400_s0 + $0x358] sm:$0xff]  ;;  %v50_v12 = vld [vmem:[%s3400_s0 + $0x120] sm:$0xff]  ;;  %v51_v14 = vld [vmem:[%s3400_s0 + $0x128] sm:$0xff] }
  0x1b   :  { %1855 = vmatmul.mubr.msk.f32.gmra.mxu0 %vm169_vm1, %v23_v22  ;;  %1963 = vmatmul.mubr.msk.f32.gmra.mxu1 %vm169_vm1, %v95_v23  ;;  %v122_v13 = vld [vmem:[%s3400_s0 + $0x360] sm:$0xff]  ;;  %v123_v15 = vld [vmem:[%s3400_s0 + $0x368] sm:$0xff]  ;;  %v52_v16 = vld [vmem:[%s3400_s0 + $0x130] sm:$0xff] }
  0x1c   :  { %1857 = vmatprep.mubr.msk.f32.mxu0 %vm169_vm1, %v24_v24  ;;  %1965 = vmatprep.mubr.msk.f32.mxu1 %vm169_vm1, %v96_v25  ;;  %v124_v17 = vld [vmem:[%s3400_s0 + $0x370] sm:$0xff]  ;;  %v53_v18 = vld [vmem:[%s3400_s0 + $0x138] sm:$0xff]  ;;  %v54_v20 = vld [vmem:[%s3400_s0 + $0x140] sm:$0xff] }
  0x1d   :  { %v125_v19 = vld [vmem:[%s3400_s0 + $0x378] sm:$0xff]  ;;  %v126_v21 = vld [vmem:[%s3400_s0 + $0x380] sm:$0xff]  ;;  %v55_v22 = vld [vmem:[%s3400_s0 + $0x148] sm:$0xff] }
  0x1e   :  { %v127_v23 = vld [vmem:[%s3400_s0 + $0x388] sm:$0xff]  ;;  %v56_v24 = vld [vmem:[%s3400_s0 + $0x150] sm:$0xff] }
  0x1f   :  { %1858 = vmatmul.mubr.msk.f32.gmra.mxu0 %vm169_vm1, %v25_v26  ;;  %1966 = vmatmul.mubr.msk.f32.gmra.mxu1 %vm169_vm1, %v97_v27  ;;  %v128_v25 = vld [vmem:[%s3400_s0 + $0x390] sm:$0xff]  ;;  %v57_v26 = vld [vmem:[%s3400_s0 + $0x158] sm:$0xff] }
  0x20   :  { %1860 = vmatprep.mubr.msk.f32.mxu0 %vm169_vm1, %v26_v28  ;;  %1968 = vmatprep.mubr.msk.f32.mxu1 %vm169_vm1, %v98_v29  ;;  %v129_v27 = vld [vmem:[%s3400_s0 + $0x398] sm:$0xff]  ;;  %v58_v28 = vld [vmem:[%s3400_s0 + $0x160] sm:$0xff] }
  0x21   :  { %v130_v29 = vld [vmem:[%s3400_s0 + $0x3a0] sm:$0xff] }
  0x23   :  { %1861 = vmatmul.mubr.msk.f32.gmra.mxu0 %vm169_vm1, %v27_v30  ;;  %1969 = vmatmul.mubr.msk.f32.gmra.mxu1 %vm169_vm1, %v99_v31  ;;  %v59_v30 = vld [vmem:[%s3400_s0 + $0x168] sm:$0xff] }
  0x24   :  { %1863 = vmatprep.mubr.msk.f32.mxu0 %vm169_vm1, %v28_v32  ;;  %1971 = vmatprep.mubr.msk.f32.mxu1 %vm169_vm1, %v100_v33  ;;  %v131_v31 = vld [vmem:[%s3400_s0 + $0x3a8] sm:$0xff]  ;;  %v60_v32 = vld [vmem:[%s3400_s0 + $0x170] sm:$0xff] }
  0x25   :  { %v132_v33 = vld [vmem:[%s3400_s0 + $0x3b0] sm:$0xff] }
  0x27   :  { %1864 = vmatmul.mubr.msk.f32.gmra.mxu0 %vm169_vm1, %v29_v34  ;;  %1972 = vmatmul.mubr.msk.f32.gmra.mxu1 %vm169_vm1, %v101_v35  ;;  %v61_v34 = vld [vmem:[%s3400_s0 + $0x178] sm:$0xff] }
  0x28   :  { %1866 = vmatprep.mubr.msk.f32.mxu0 %vm169_vm1, %v30_v36  ;;  %1974 = vmatprep.mubr.msk.f32.mxu1 %vm169_vm1, %v102_v37  ;;  %v133_v35 = vld [vmem:[%s3400_s0 + $0x3b8] sm:$0xff]  ;;  %v62_v36 = vld [vmem:[%s3400_s0 + $0x180] sm:$0xff] }
  0x29   :  { %v134_v37 = vld [vmem:[%s3400_s0 + $0x3c0] sm:$0xff] }
  0x2b   :  { %1867 = vmatmul.mubr.msk.f32.gmra.mxu0 %vm169_vm1, %v31_v38  ;;  %1975 = vmatmul.mubr.msk.f32.gmra.mxu1 %vm169_vm1, %v103_v39  ;;  %v63_v38 = vld [vmem:[%s3400_s0 + $0x188] sm:$0xff] }
  0x2c   :  { %1869 = vmatprep.mubr.msk.f32.mxu0 %vm169_vm1, %v32_v40  ;;  %1977 = vmatprep.mubr.msk.f32.mxu1 %vm169_vm1, %v104_v41  ;;  %v135_v39 = vld [vmem:[%s3400_s0 + $0x3c8] sm:$0xff]  ;;  %v64_v40 = vld [vmem:[%s3400_s0 + $0x190] sm:$0xff] }
  0x2d   :  { %v136_v41 = vld [vmem:[%s3400_s0 + $0x3d0] sm:$0xff] }
  0x2f   :  { %1870 = vmatmul.mubr.msk.f32.gmra.mxu0 %vm169_vm1, %v33_v42  ;;  %1978 = vmatmul.mubr.msk.f32.gmra.mxu1 %vm169_vm1, %v105_v43  ;;  %v65_v42 = vld [vmem:[%s3400_s0 + $0x198] sm:$0xff] }
  0x30   :  { %1872 = vmatprep.mubr.msk.f32.mxu0 %vm169_vm1, %v34_v44  ;;  %1980 = vmatprep.mubr.msk.f32.mxu1 %vm169_vm1, %v106_v45  ;;  %v137_v43 = vld [vmem:[%s3400_s0 + $0x3d8] sm:$0xff]  ;;  %v66_v44 = vld [vmem:[%s3400_s0 + $0x1a0] sm:$0xff] }
  0x31   :  { %v138_v45 = vld [vmem:[%s3400_s0 + $0x3e0] sm:$0xff] }
  0x33   :  { %1873 = vmatmul.mubr.msk.f32.gmra.mxu0 %vm169_vm1, %v35_v46  ;;  %1981 = vmatmul.mubr.msk.f32.gmra.mxu1 %vm169_vm1, %v107_v47  ;;  %v67_v46 = vld [vmem:[%s3400_s0 + $0x1a8] sm:$0xff] }
  0x34   :  { %1875 = vmatprep.mubr.msk.f32.mxu0 %vm169_vm1, %v36_v48  ;;  %1983 = vmatprep.mubr.msk.f32.mxu1 %vm169_vm1, %v108_v49  ;;  %v139_v47 = vld [vmem:[%s3400_s0 + $0x3e8] sm:$0xff]  ;;  %v68_v48 = vld [vmem:[%s3400_s0 + $0x1b0] sm:$0xff] }
  0x35   :  { %v140_v49 = vld [vmem:[%s3400_s0 + $0x3f0] sm:$0xff] }
  0x37   :  { %1876 = vmatmul.mubr.msk.f32.gmra.mxu0 %vm169_vm1, %v37_v50  ;;  %1984 = vmatmul.mubr.msk.f32.gmra.mxu1 %vm169_vm1, %v109_v51  ;;  %v69_v50 = vld [vmem:[%s3400_s0 + $0x1b8] sm:$0xff] }
  0x38   :  { %1878 = vmatprep.mubr.msk.f32.mxu0 %vm169_vm1, %v38_v52  ;;  %1986 = vmatprep.mubr.msk.f32.mxu1 %vm169_vm1, %v110_v53  ;;  %v141_v51 = vld [vmem:[%s3400_s0 + $0x3f8] sm:$0xff]  ;;  %v70_v52 = vld [vmem:[%s3400_s0 + $0x1c0] sm:$0xff] }
  0x39   :  { %v142_v53 = vld [vmem:[%s3400_s0 + $0x400] sm:$0xff] }
  0x3b   :  { %1879 = vmatmul.mubr.msk.f32.gmra.mxu0 %vm169_vm1, %v39_v54  ;;  %1987 = vmatmul.mubr.msk.f32.gmra.mxu1 %vm169_vm1, %v111_v55  ;;  %v71_v54 = vld [vmem:[%s3400_s0 + $0x1c8] sm:$0xff] }
  0x3c   :  { %1881 = vmatprep.mubr.msk.f32.mxu0 %vm169_vm1, %v40_v56  ;;  %1989 = vmatprep.mubr.msk.f32.mxu1 %vm169_vm1, %v112_v57  ;;  %v143_v55 = vld [vmem:[%s3400_s0 + $0x408] sm:$0xff]  ;;  %v72_v56 = vld [vmem:[%s3400_s0 + $0x1d0] sm:$0xff] }
  0x3d   :  { %v144_v57 = vld [vmem:[%s3400_s0 + $0x410] sm:$0xff] }
  0x3f   :  { %1882 = vmatmul.mubr.msk.f32.gmra.mxu0 %vm169_vm1, %v41_v58  ;;  %1990 = vmatmul.mubr.msk.f32.gmra.mxu1 %vm169_vm1, %v113_v59  ;;  %v73_v58 = vld [vmem:[%s3400_s0 + $0x1d8] sm:$0xff] }
  0x40   :  { %1884 = vmatprep.mubr.msk.f32.mxu0 %vm169_vm1, %v42_v60  ;;  %1992 = vmatprep.mubr.msk.f32.mxu1 %vm169_vm1, %v114_v61  ;;  %v145_v59 = vld [vmem:[%s3400_s0 + $0x418] sm:$0xff]  ;;  %v74_v60 = vld [vmem:[%s3400_s0 + $0x1e0] sm:$0xff] }
  0x41   :  { %v146_v61 = vld [vmem:[%s3400_s0 + $0x420] sm:$0xff] }
  0x43   :  { %1885 = vmatmul.mubr.msk.f32.gmra.mxu0 %vm169_vm1, %v43_v62  ;;  %1993 = vmatmul.mubr.msk.f32.gmra.mxu1 %vm169_vm1, %v115_v63  ;;  %v75_v62 = vld [vmem:[%s3400_s0 + $0x1e8] sm:$0xff] }
  0x44   :  { %1887 = vmatprep.mubr.msk.f32.mxu0 %vm169_vm1, %v44_v0  ;;  %1995 = vmatprep.mubr.msk.f32.mxu1 %vm169_vm1, %v116_v1  ;;  %v147_v63 = vld [vmem:[%s3400_s0 + $0x428] sm:$0xff]  ;;  %v76_v0 = vld [vmem:[%s3400_s0 + $0x1f0] sm:$0xff] }
  0x45   :  { %v148_v1 = vld [vmem:[%s3400_s0 + $0x430] sm:$0xff] }
  0x47   :  { %1888 = vmatmul.mubr.msk.f32.gmra.mxu0 %vm169_vm1, %v45_v2  ;;  %1996 = vmatmul.mubr.msk.f32.gmra.mxu1 %vm169_vm1, %v117_v3  ;;  %v77_v2 = vld [vmem:[%s3400_s0 + $0x1f8] sm:$0xff] }
  0x48   :  { %1890 = vmatprep.mubr.msk.f32.mxu0 %vm169_vm1, %v46_v4  ;;  %1998 = vmatprep.mubr.msk.f32.mxu1 %vm169_vm1, %v118_v5  ;;  %v149_v3 = vld [vmem:[%s3400_s0 + $0x438] sm:$0xff]  ;;  %v78_v4 = vld [vmem:[%s3400_s0 + $0x200] sm:$0xff] }
  0x49   :  { %v150_v5 = vld [vmem:[%s3400_s0 + $0x440] sm:$0xff] }
  0x4b   :  { %1891 = vmatmul.mubr.msk.f32.gmra.mxu0 %vm169_vm1, %v47_v6  ;;  %1999 = vmatmul.mubr.msk.f32.gmra.mxu1 %vm169_vm1, %v119_v7  ;;  %v79_v6 = vld [vmem:[%s3400_s0 + $0x208] sm:$0xff] }
  0x4c   :  { %1893 = vmatprep.mubr.msk.f32.mxu0 %vm169_vm1, %v48_v8  ;;  %2001 = vmatprep.mubr.msk.f32.mxu1 %vm169_vm1, %v120_v9  ;;  %v151_v7 = vld [vmem:[%s3400_s0 + $0x448] sm:$0xff]  ;;  %v80_v8 = vld [vmem:[%s3400_s0 + $0x210] sm:$0xff] }
  0x4d   :  { %v152_v9 = vld [vmem:[%s3400_s0 + $0x450] sm:$0xff] }
  0x4f   :  { %1894 = vmatmul.mubr.msk.f32.gmra.mxu0 %vm169_vm1, %v49_v10  ;;  %2002 = vmatmul.mubr.msk.f32.gmra.mxu1 %vm169_vm1, %v121_v11  ;;  %v81_v10 = vld [vmem:[%s3400_s0 + $0x218] sm:$0xff] }
  0x50   :  { %1896 = vmatprep.mubr.msk.f32.mxu0 %vm169_vm1, %v50_v12  ;;  %2004 = vmatprep.mubr.msk.f32.mxu1 %vm169_vm1, %v122_v13  ;;  %v153_v11 = vld [vmem:[%s3400_s0 + $0x458] sm:$0xff]  ;;  %v82_v12 = vld [vmem:[%s3400_s0 + $0x220] sm:$0xff] }
  0x51   :  { %v154_v13 = vld [vmem:[%s3400_s0 + $0x460] sm:$0xff] }
  0x53   :  { %1897 = vmatmul.mubr.msk.f32.gmra.mxu0 %vm169_vm1, %v51_v14  ;;  %2005 = vmatmul.mubr.msk.f32.gmra.mxu1 %vm169_vm1, %v123_v15  ;;  %v83_v14 = vld [vmem:[%s3400_s0 + $0x228] sm:$0xff] }
  0x54   :  { %1899 = vmatprep.mubr.msk.f32.mxu0 %vm169_vm1, %v52_v16  ;;  %2007 = vmatprep.mubr.msk.f32.mxu1 %vm169_vm1, %v124_v17  ;;  %v155_v15 = vld [vmem:[%s3400_s0 + $0x468] sm:$0xff]  ;;  %v84_v16 = vld [vmem:[%s3400_s0 + $0x230] sm:$0xff] }
  0x55   :  { %v156_v17 = vld [vmem:[%s3400_s0 + $0x470] sm:$0xff] }
  0x57   :  { %1900 = vmatmul.mubr.msk.f32.gmra.mxu0 %vm169_vm1, %v53_v18  ;;  %2008 = vmatmul.mubr.msk.f32.gmra.mxu1 %vm169_vm1, %v125_v19  ;;  %v85_v18 = vld [vmem:[%s3400_s0 + $0x238] sm:$0xff] }
  0x58   :  { %1902 = vmatprep.mubr.msk.f32.mxu0 %vm169_vm1, %v54_v20  ;;  %2010 = vmatprep.mubr.msk.f32.mxu1 %vm169_vm1, %v126_v21  ;;  %v157_v19 = vld [vmem:[%s3400_s0 + $0x478] sm:$0xff]  ;;  %v2677_v20 = vld [vmem:[%s3401_s2] ss:$0 sm:$0xff] }
  0x5b   :  { %1903 = vmatmul.mubr.msk.f32.gmra.mxu0 %vm169_vm1, %v55_v22  ;;  %2011 = vmatmul.mubr.msk.f32.gmra.mxu1 %vm169_vm1, %v127_v23 }
  0x5c   :  { %1905 = vmatprep.mubr.msk.f32.mxu0 %vm169_vm1, %v56_v24  ;;  %2013 = vmatprep.mubr.msk.f32.mxu1 %vm169_vm1, %v128_v25 }
  0x5f   :  { %1906 = vmatmul.mubr.msk.f32.gmra.mxu0 %vm169_vm1, %v57_v26  ;;  %2014 = vmatmul.mubr.msk.f32.gmra.mxu1 %vm169_vm1, %v129_v27 }
  0x60   :  { %1908 = vmatprep.mubr.msk.f32.mxu0 %vm169_vm1, %v58_v28  ;;  %2016 = vmatprep.mubr.msk.f32.mxu1 %vm169_vm1, %v130_v29 }
  0x63   :  { %1909 = vmatmul.mubr.msk.f32.gmra.mxu0 %vm169_vm1, %v59_v30  ;;  %2017 = vmatmul.mubr.msk.f32.gmra.mxu1 %vm169_vm1, %v131_v31 }
  0x64   :  { %1911 = vmatprep.mubr.msk.f32.mxu0 %vm169_vm1, %v60_v32  ;;  %2019 = vmatprep.mubr.msk.f32.mxu1 %vm169_vm1, %v132_v33 }
  0x67   :  { %1912 = vmatmul.mubr.msk.f32.gmra.mxu0 %vm169_vm1, %v61_v34  ;;  %2020 = vmatmul.mubr.msk.f32.gmra.mxu1 %vm169_vm1, %v133_v35 }
  0x68   :  { %1914 = vmatprep.mubr.msk.f32.mxu0 %vm169_vm1, %v62_v36  ;;  %2022 = vmatprep.mubr.msk.f32.mxu1 %vm169_vm1, %v134_v37 }
  0x6b   :  { %1915 = vmatmul.mubr.msk.f32.gmra.mxu0 %vm169_vm1, %v63_v38  ;;  %2023 = vmatmul.mubr.msk.f32.gmra.mxu1 %vm169_vm1, %v135_v39 }
  0x6c   :  { %1917 = vmatprep.mubr.msk.f32.mxu0 %vm169_vm1, %v64_v40  ;;  %2025 = vmatprep.mubr.msk.f32.mxu1 %vm169_vm1, %v136_v41 }
  0x6f   :  { %1918 = vmatmul.mubr.msk.f32.gmra.mxu0 %vm169_vm1, %v65_v42  ;;  %2026 = vmatmul.mubr.msk.f32.gmra.mxu1 %vm169_vm1, %v137_v43 }
  0x70   :  { %1920 = vmatprep.mubr.msk.f32.mxu0 %vm169_vm1, %v66_v44  ;;  %2028 = vmatprep.mubr.msk.f32.mxu1 %vm169_vm1, %v138_v45 }
  0x73   :  { %1921 = vmatmul.mubr.msk.f32.gmra.mxu0 %vm169_vm1, %v67_v46  ;;  %2029 = vmatmul.mubr.msk.f32.gmra.mxu1 %vm169_vm1, %v139_v47 }
  0x74   :  { %1923 = vmatprep.mubr.msk.f32.mxu0 %vm169_vm1, %v68_v48  ;;  %2031 = vmatprep.mubr.msk.f32.mxu1 %vm169_vm1, %v140_v49 }
  0x77   :  { %1924 = vmatmul.mubr.msk.f32.gmra.mxu0 %vm169_vm1, %v69_v50  ;;  %2032 = vmatmul.mubr.msk.f32.gmra.mxu1 %vm169_vm1, %v141_v51 }
  0x78   :  { %1926 = vmatprep.mubr.msk.f32.mxu0 %vm169_vm1, %v70_v52  ;;  %2034 = vmatprep.mubr.msk.f32.mxu1 %vm169_vm1, %v142_v53 }
  0x7b   :  { %1927 = vmatmul.mubr.msk.f32.gmra.mxu0 %vm169_vm1, %v71_v54  ;;  %2035 = vmatmul.mubr.msk.f32.gmra.mxu1 %vm169_vm1, %v143_v55 }
  0x7c   :  { %1929 = vmatprep.mubr.msk.f32.mxu0 %vm169_vm1, %v72_v56  ;;  %2037 = vmatprep.mubr.msk.f32.mxu1 %vm169_vm1, %v144_v57 }
  0x7f   :  { %1930 = vmatmul.mubr.msk.f32.gmra.mxu0 %vm169_vm1, %v73_v58  ;;  %2038 = vmatmul.mubr.msk.f32.gmra.mxu1 %vm169_vm1, %v145_v59 }
  0x80   :  { %1932 = vmatprep.mubr.msk.f32.mxu0 %vm169_vm1, %v74_v60  ;;  %2040 = vmatprep.mubr.msk.f32.mxu1 %vm169_vm1, %v146_v61 }
  0x83   :  { %1933 = vmatmul.mubr.msk.f32.gmra.mxu0 %vm169_vm1, %v75_v62  ;;  %2041 = vmatmul.mubr.msk.f32.gmra.mxu1 %vm169_vm1, %v147_v63 }
  0x84   :  { %1935 = vmatprep.mubr.msk.f32.mxu0 %vm169_vm1, %v76_v0  ;;  %2043 = vmatprep.mubr.msk.f32.mxu1 %vm169_vm1, %v148_v1 }
  0x87   :  { %1936 = vmatmul.mubr.msk.f32.gmra.mxu0 %vm169_vm1, %v77_v2  ;;  %2044 = vmatmul.mubr.msk.f32.gmra.mxu1 %vm169_vm1, %v149_v3 }
  0x88   :  { %1938 = vmatprep.mubr.msk.f32.mxu0 %vm169_vm1, %v78_v4  ;;  %2046 = vmatprep.mubr.msk.f32.mxu1 %vm169_vm1, %v150_v5 }
  0x8b   :  { %1939 = vmatmul.mubr.msk.f32.gmra.mxu0 %vm169_vm1, %v79_v6  ;;  %2047 = vmatmul.mubr.msk.f32.gmra.mxu1 %vm169_vm1, %v151_v7 }
  0x8c   :  { %1941 = vmatprep.mubr.msk.f32.mxu0 %vm169_vm1, %v80_v8  ;;  %2049 = vmatprep.mubr.msk.f32.mxu1 %vm169_vm1, %v152_v9 }
  0x8f   :  { %1942 = vmatmul.mubr.msk.f32.gmra.mxu0 %vm169_vm1, %v81_v10  ;;  %2050 = vmatmul.mubr.msk.f32.gmra.mxu1 %vm169_vm1, %v153_v11 }
  0x90   :  { %1944 = vmatprep.mubr.msk.f32.mxu0 %vm169_vm1, %v82_v12  ;;  %2052 = vmatprep.mubr.msk.f32.mxu1 %vm169_vm1, %v154_v13 }
  0x93   :  { %1945 = vmatmul.mubr.msk.f32.gmra.mxu0 %vm169_vm1, %v83_v14  ;;  %2053 = vmatmul.mubr.msk.f32.gmra.mxu1 %vm169_vm1, %v155_v15 }
  0x94   :  { %1947 = vmatprep.mubr.msk.f32.mxu0 %vm169_vm1, %v84_v16  ;;  %2055 = vmatprep.mubr.msk.f32.mxu1 %vm169_vm1, %v156_v17 }
  0x97   :  { %1948 = vmatmul.mubr.msk.f32.gmra.mxu0 %vm169_vm1, %v85_v18  ;;  %2056 = vmatmul.mubr.msk.f32.gmra.mxu1 %vm169_vm1, %v157_v19 }
  0xcb   :  { %v1844_v21 = vpop.f32.mrf.mxu0  ;;  %v1952_v22 = vpop.f32.mrf.mxu1 }
  0xcc   :  { %v678_v23 = vadd.f32 %v1844_v21, %v2677_v20  ;;  %v1038_v24 = vadd.f32 %v1952_v22, %v2677_v20 }
  0xcd   :  { %v672_v25 = vpop.f32.mrf.mxu0  ;;  %v1032_v26 = vpop.f32.mrf.mxu1 }
  0xce   :  { %1393 = vst.msk [vmem:[%s3402_s3 + $0x8] sm:$0xff] %vm1391_vm2, %v678_v23  ;;  %1465 = vst.msk [vmem:[%s3402_s3 + $0x248] sm:$0xff] %vm1391_vm2, %v1038_v24  ;;  %v673_v27 = vadd.f32 %v2677_v20, %v672_v25  ;;  %v1033_v28 = vadd.f32 %v2677_v20, %v1032_v26 }
  0xcf   :  { %v1847_v29 = vpop.f32.mrf.mxu0  ;;  %v1955_v30 = vpop.f32.mrf.mxu1 }
  0xd0   :  { %1392 = vst.msk [vmem:[%s3402_s3] sm:$0xff] %vm1391_vm2, %v673_v27  ;;  %1464 = vst.msk [vmem:[%s3402_s3 + $0x240] sm:$0xff] %vm1391_vm2, %v1033_v28  ;;  %v688_v31 = vadd.f32 %v1847_v29, %v2677_v20  ;;  %v1048_v32 = vadd.f32 %v1955_v30, %v2677_v20 }
  0xd1   :  { %v682_v33 = vpop.f32.mrf.mxu0  ;;  %v1042_v34 = vpop.f32.mrf.mxu1 }
  0xd2   :  { %1395 = vst.msk [vmem:[%s3402_s3 + $0x18] sm:$0xff] %vm1391_vm2, %v688_v31  ;;  %1467 = vst.msk [vmem:[%s3402_s3 + $0x258] sm:$0xff] %vm1391_vm2, %v1048_v32  ;;  %v683_v35 = vadd.f32 %v2677_v20, %v682_v33  ;;  %v1043_v36 = vadd.f32 %v2677_v20, %v1042_v34 }
  0xd3   :  { %v1850_v37 = vpop.f32.mrf.mxu0  ;;  %v1958_v38 = vpop.f32.mrf.mxu1 }
  0xd4   :  { %1394 = vst.msk [vmem:[%s3402_s3 + $0x10] sm:$0xff] %vm1391_vm2, %v683_v35  ;;  %1466 = vst.msk [vmem:[%s3402_s3 + $0x250] sm:$0xff] %vm1391_vm2, %v1043_v36  ;;  %v698_v39 = vadd.f32 %v1850_v37, %v2677_v20  ;;  %v1058_v40 = vadd.f32 %v1958_v38, %v2677_v20 }
  0xd5   :  { %v692_v41 = vpop.f32.mrf.mxu0  ;;  %v1052_v42 = vpop.f32.mrf.mxu1 }
  0xd6   :  { %1397 = vst.msk [vmem:[%s3402_s3 + $0x28] sm:$0xff] %vm1391_vm2, %v698_v39  ;;  %1469 = vst.msk [vmem:[%s3402_s3 + $0x268] sm:$0xff] %vm1391_vm2, %v1058_v40  ;;  %v693_v43 = vadd.f32 %v2677_v20, %v692_v41  ;;  %v1053_v44 = vadd.f32 %v2677_v20, %v1052_v42 }
  0xd7   :  { %v1853_v45 = vpop.f32.mrf.mxu0  ;;  %v1961_v46 = vpop.f32.mrf.mxu1 }
  0xd8   :  { %1396 = vst.msk [vmem:[%s3402_s3 + $0x20] sm:$0xff] %vm1391_vm2, %v693_v43  ;;  %1468 = vst.msk [vmem:[%s3402_s3 + $0x260] sm:$0xff] %vm1391_vm2, %v1053_v44  ;;  %v708_v47 = vadd.f32 %v1853_v45, %v2677_v20  ;;  %v1068_v48 = vadd.f32 %v1961_v46, %v2677_v20 }
  0xd9   :  { %v702_v49 = vpop.f32.mrf.mxu0  ;;  %v1062_v50 = vpop.f32.mrf.mxu1 }
  0xda   :  { %1399 = vst.msk [vmem:[%s3402_s3 + $0x38] sm:$0xff] %vm1391_vm2, %v708_v47  ;;  %1471 = vst.msk [vmem:[%s3402_s3 + $0x278] sm:$0xff] %vm1391_vm2, %v1068_v48  ;;  %v703_v51 = vadd.f32 %v2677_v20, %v702_v49  ;;  %v1063_v52 = vadd.f32 %v2677_v20, %v1062_v50 }
  0xdb   :  { %v1856_v53 = vpop.f32.mrf.mxu0  ;;  %v1964_v54 = vpop.f32.mrf.mxu1 }
  0xdc   :  { %1398 = vst.msk [vmem:[%s3402_s3 + $0x30] sm:$0xff] %vm1391_vm2, %v703_v51  ;;  %1470 = vst.msk [vmem:[%s3402_s3 + $0x270] sm:$0xff] %vm1391_vm2, %v1063_v52  ;;  %v718_v55 = vadd.f32 %v1856_v53, %v2677_v20  ;;  %v1078_v56 = vadd.f32 %v1964_v54, %v2677_v20 }
  0xdd   :  { %v712_v57 = vpop.f32.mrf.mxu0  ;;  %v1072_v58 = vpop.f32.mrf.mxu1 }
  0xde   :  { %1401 = vst.msk [vmem:[%s3402_s3 + $0x48] sm:$0xff] %vm1391_vm2, %v718_v55  ;;  %1473 = vst.msk [vmem:[%s3402_s3 + $0x288] sm:$0xff] %vm1391_vm2, %v1078_v56  ;;  %v713_v59 = vadd.f32 %v2677_v20, %v712_v57  ;;  %v1073_v60 = vadd.f32 %v2677_v20, %v1072_v58 }
  0xdf   :  { %v1859_v61 = vpop.f32.mrf.mxu0  ;;  %v1967_v62 = vpop.f32.mrf.mxu1 }
  0xe0   :  { %1400 = vst.msk [vmem:[%s3402_s3 + $0x40] sm:$0xff] %vm1391_vm2, %v713_v59  ;;  %1472 = vst.msk [vmem:[%s3402_s3 + $0x280] sm:$0xff] %vm1391_vm2, %v1073_v60  ;;  %v728_v63 = vadd.f32 %v1859_v61, %v2677_v20  ;;  %v1088_v0 = vadd.f32 %v1967_v62, %v2677_v20 }
  0xe1   :  { %v722_v1 = vpop.f32.mrf.mxu0  ;;  %v1082_v2 = vpop.f32.mrf.mxu1 }
  0xe2   :  { %1403 = vst.msk [vmem:[%s3402_s3 + $0x58] sm:$0xff] %vm1391_vm2, %v728_v63  ;;  %1475 = vst.msk [vmem:[%s3402_s3 + $0x298] sm:$0xff] %vm1391_vm2, %v1088_v0  ;;  %v723_v3 = vadd.f32 %v2677_v20, %v722_v1  ;;  %v1083_v4 = vadd.f32 %v2677_v20, %v1082_v2 }
  0xe3   :  { %v1862_v5 = vpop.f32.mrf.mxu0  ;;  %v1970_v6 = vpop.f32.mrf.mxu1 }
  0xe4   :  { %1402 = vst.msk [vmem:[%s3402_s3 + $0x50] sm:$0xff] %vm1391_vm2, %v723_v3  ;;  %1474 = vst.msk [vmem:[%s3402_s3 + $0x290] sm:$0xff] %vm1391_vm2, %v1083_v4  ;;  %v738_v7 = vadd.f32 %v1862_v5, %v2677_v20  ;;  %v1098_v8 = vadd.f32 %v1970_v6, %v2677_v20 }
  0xe5   :  { %v732_v9 = vpop.f32.mrf.mxu0  ;;  %v1092_v10 = vpop.f32.mrf.mxu1 }
  0xe6   :  { %1405 = vst.msk [vmem:[%s3402_s3 + $0x68] sm:$0xff] %vm1391_vm2, %v738_v7  ;;  %1477 = vst.msk [vmem:[%s3402_s3 + $0x2a8] sm:$0xff] %vm1391_vm2, %v1098_v8  ;;  %v733_v11 = vadd.f32 %v2677_v20, %v732_v9  ;;  %v1093_v12 = vadd.f32 %v2677_v20, %v1092_v10 }
  0xe7   :  { %v1865_v13 = vpop.f32.mrf.mxu0  ;;  %v1973_v14 = vpop.f32.mrf.mxu1 }
  0xe8   :  { %1404 = vst.msk [vmem:[%s3402_s3 + $0x60] sm:$0xff] %vm1391_vm2, %v733_v11  ;;  %1476 = vst.msk [vmem:[%s3402_s3 + $0x2a0] sm:$0xff] %vm1391_vm2, %v1093_v12  ;;  %v748_v15 = vadd.f32 %v1865_v13, %v2677_v20  ;;  %v1108_v16 = vadd.f32 %v1973_v14, %v2677_v20 }
  0xe9   :  { %v742_v17 = vpop.f32.mrf.mxu0  ;;  %v1102_v18 = vpop.f32.mrf.mxu1 }
  0xea   :  { %1407 = vst.msk [vmem:[%s3402_s3 + $0x78] sm:$0xff] %vm1391_vm2, %v748_v15  ;;  %1479 = vst.msk [vmem:[%s3402_s3 + $0x2b8] sm:$0xff] %vm1391_vm2, %v1108_v16  ;;  %v743_v19 = vadd.f32 %v2677_v20, %v742_v17  ;;  %v1103_v21 = vadd.f32 %v2677_v20, %v1102_v18 }
  0xeb   :  { %v1868_v22 = vpop.f32.mrf.mxu0  ;;  %v1976_v23 = vpop.f32.mrf.mxu1 }
  0xec   :  { %1406 = vst.msk [vmem:[%s3402_s3 + $0x70] sm:$0xff] %vm1391_vm2, %v743_v19  ;;  %1478 = vst.msk [vmem:[%s3402_s3 + $0x2b0] sm:$0xff] %vm1391_vm2, %v1103_v21  ;;  %v758_v24 = vadd.f32 %v1868_v22, %v2677_v20  ;;  %v1118_v25 = vadd.f32 %v1976_v23, %v2677_v20 }
  0xed   :  { %v752_v26 = vpop.f32.mrf.mxu0  ;;  %v1112_v27 = vpop.f32.mrf.mxu1 }
  0xee   :  { %1409 = vst.msk [vmem:[%s3402_s3 + $0x88] sm:$0xff] %vm1391_vm2, %v758_v24  ;;  %1481 = vst.msk [vmem:[%s3402_s3 + $0x2c8] sm:$0xff] %vm1391_vm2, %v1118_v25  ;;  %v753_v28 = vadd.f32 %v2677_v20, %v752_v26  ;;  %v1113_v29 = vadd.f32 %v2677_v20, %v1112_v27 }
  0xef   :  { %v1871_v30 = vpop.f32.mrf.mxu0  ;;  %v1979_v31 = vpop.f32.mrf.mxu1 }
  0xf0   :  { %1408 = vst.msk [vmem:[%s3402_s3 + $0x80] sm:$0xff] %vm1391_vm2, %v753_v28  ;;  %1480 = vst.msk [vmem:[%s3402_s3 + $0x2c0] sm:$0xff] %vm1391_vm2, %v1113_v29  ;;  %v768_v32 = vadd.f32 %v1871_v30, %v2677_v20  ;;  %v1128_v33 = vadd.f32 %v1979_v31, %v2677_v20 }
  0xf1   :  { %v762_v34 = vpop.f32.mrf.mxu0  ;;  %v1122_v35 = vpop.f32.mrf.mxu1 }
  0xf2   :  { %1411 = vst.msk [vmem:[%s3402_s3 + $0x98] sm:$0xff] %vm1391_vm2, %v768_v32  ;;  %1483 = vst.msk [vmem:[%s3402_s3 + $0x2d8] sm:$0xff] %vm1391_vm2, %v1128_v33  ;;  %v763_v36 = vadd.f32 %v2677_v20, %v762_v34  ;;  %v1123_v37 = vadd.f32 %v2677_v20, %v1122_v35 }
  0xf3   :  { %v1874_v38 = vpop.f32.mrf.mxu0  ;;  %v1982_v39 = vpop.f32.mrf.mxu1 }
  0xf4   :  { %1410 = vst.msk [vmem:[%s3402_s3 + $0x90] sm:$0xff] %vm1391_vm2, %v763_v36  ;;  %1482 = vst.msk [vmem:[%s3402_s3 + $0x2d0] sm:$0xff] %vm1391_vm2, %v1123_v37  ;;  %v778_v40 = vadd.f32 %v1874_v38, %v2677_v20  ;;  %v1138_v41 = vadd.f32 %v1982_v39, %v2677_v20 }
  0xf5   :  { %v772_v42 = vpop.f32.mrf.mxu0  ;;  %v1132_v43 = vpop.f32.mrf.mxu1 }
  0xf6   :  { %1413 = vst.msk [vmem:[%s3402_s3 + $0xa8] sm:$0xff] %vm1391_vm2, %v778_v40  ;;  %1485 = vst.msk [vmem:[%s3402_s3 + $0x2e8] sm:$0xff] %vm1391_vm2, %v1138_v41  ;;  %v773_v44 = vadd.f32 %v2677_v20, %v772_v42  ;;  %v1133_v45 = vadd.f32 %v2677_v20, %v1132_v43 }
  0xf7   :  { %v1877_v46 = vpop.f32.mrf.mxu0  ;;  %v1985_v47 = vpop.f32.mrf.mxu1 }
  0xf8   :  { %1412 = vst.msk [vmem:[%s3402_s3 + $0xa0] sm:$0xff] %vm1391_vm2, %v773_v44  ;;  %1484 = vst.msk [vmem:[%s3402_s3 + $0x2e0] sm:$0xff] %vm1391_vm2, %v1133_v45  ;;  %v788_v48 = vadd.f32 %v1877_v46, %v2677_v20  ;;  %v1148_v49 = vadd.f32 %v1985_v47, %v2677_v20 }
  0xf9   :  { %v782_v50 = vpop.f32.mrf.mxu0  ;;  %v1142_v51 = vpop.f32.mrf.mxu1 }
  0xfa   :  { %1415 = vst.msk [vmem:[%s3402_s3 + $0xb8] sm:$0xff] %vm1391_vm2, %v788_v48  ;;  %1487 = vst.msk [vmem:[%s3402_s3 + $0x2f8] sm:$0xff] %vm1391_vm2, %v1148_v49  ;;  %v783_v52 = vadd.f32 %v2677_v20, %v782_v50  ;;  %v1143_v53 = vadd.f32 %v2677_v20, %v1142_v51 }
  0xfb   :  { %v1880_v54 = vpop.f32.mrf.mxu0  ;;  %v1988_v55 = vpop.f32.mrf.mxu1 }
  0xfc   :  { %1414 = vst.msk [vmem:[%s3402_s3 + $0xb0] sm:$0xff] %vm1391_vm2, %v783_v52  ;;  %1486 = vst.msk [vmem:[%s3402_s3 + $0x2f0] sm:$0xff] %vm1391_vm2, %v1143_v53  ;;  %v798_v56 = vadd.f32 %v1880_v54, %v2677_v20  ;;  %v1158_v57 = vadd.f32 %v1988_v55, %v2677_v20 }
  0xfd   :  { %v792_v58 = vpop.f32.mrf.mxu0  ;;  %v1152_v59 = vpop.f32.mrf.mxu1 }
  0xfe   :  { %1417 = vst.msk [vmem:[%s3402_s3 + $0xc8] sm:$0xff] %vm1391_vm2, %v798_v56  ;;  %1489 = vst.msk [vmem:[%s3402_s3 + $0x308] sm:$0xff] %vm1391_vm2, %v1158_v57  ;;  %v793_v60 = vadd.f32 %v2677_v20, %v792_v58  ;;  %v1153_v61 = vadd.f32 %v2677_v20, %v1152_v59 }
  0xff   :  { %v1883_v62 = vpop.f32.mrf.mxu0  ;;  %v1991_v63 = vpop.f32.mrf.mxu1 }
 0x100   :  { %1416 = vst.msk [vmem:[%s3402_s3 + $0xc0] sm:$0xff] %vm1391_vm2, %v793_v60  ;;  %1488 = vst.msk [vmem:[%s3402_s3 + $0x300] sm:$0xff] %vm1391_vm2, %v1153_v61  ;;  %v808_v0 = vadd.f32 %v1883_v62, %v2677_v20  ;;  %v1168_v1 = vadd.f32 %v1991_v63, %v2677_v20 }
 0x101   :  { %v802_v2 = vpop.f32.mrf.mxu0  ;;  %v1162_v3 = vpop.f32.mrf.mxu1 }
 0x102   :  { %1419 = vst.msk [vmem:[%s3402_s3 + $0xd8] sm:$0xff] %vm1391_vm2, %v808_v0  ;;  %1491 = vst.msk [vmem:[%s3402_s3 + $0x318] sm:$0xff] %vm1391_vm2, %v1168_v1  ;;  %v803_v4 = vadd.f32 %v2677_v20, %v802_v2  ;;  %v1163_v5 = vadd.f32 %v2677_v20, %v1162_v3 }
 0x103   :  { %v1886_v6 = vpop.f32.mrf.mxu0  ;;  %v1994_v7 = vpop.f32.mrf.mxu1 }
 0x104   :  { %1418 = vst.msk [vmem:[%s3402_s3 + $0xd0] sm:$0xff] %vm1391_vm2, %v803_v4  ;;  %1490 = vst.msk [vmem:[%s3402_s3 + $0x310] sm:$0xff] %vm1391_vm2, %v1163_v5  ;;  %v818_v8 = vadd.f32 %v1886_v6, %v2677_v20  ;;  %v1178_v9 = vadd.f32 %v1994_v7, %v2677_v20 }
 0x105   :  { %v812_v10 = vpop.f32.mrf.mxu0  ;;  %v1172_v11 = vpop.f32.mrf.mxu1 }
 0x106   :  { %1421 = vst.msk [vmem:[%s3402_s3 + $0xe8] sm:$0xff] %vm1391_vm2, %v818_v8  ;;  %1493 = vst.msk [vmem:[%s3402_s3 + $0x328] sm:$0xff] %vm1391_vm2, %v1178_v9  ;;  %v813_v12 = vadd.f32 %v2677_v20, %v812_v10  ;;  %v1173_v13 = vadd.f32 %v2677_v20, %v1172_v11 }
 0x107   :  { %v1889_v14 = vpop.f32.mrf.mxu0  ;;  %v1997_v15 = vpop.f32.mrf.mxu1 }
 0x108   :  { %1420 = vst.msk [vmem:[%s3402_s3 + $0xe0] sm:$0xff] %vm1391_vm2, %v813_v12  ;;  %1492 = vst.msk [vmem:[%s3402_s3 + $0x320] sm:$0xff] %vm1391_vm2, %v1173_v13  ;;  %v828_v16 = vadd.f32 %v1889_v14, %v2677_v20  ;;  %v1188_v17 = vadd.f32 %v1997_v15, %v2677_v20 }
 0x109   :  { %v822_v18 = vpop.f32.mrf.mxu0  ;;  %v1182_v19 = vpop.f32.mrf.mxu1 }
 0x10a   :  { %1423 = vst.msk [vmem:[%s3402_s3 + $0xf8] sm:$0xff] %vm1391_vm2, %v828_v16  ;;  %1495 = vst.msk [vmem:[%s3402_s3 + $0x338] sm:$0xff] %vm1391_vm2, %v1188_v17  ;;  %v823_v21 = vadd.f32 %v2677_v20, %v822_v18  ;;  %v1183_v22 = vadd.f32 %v2677_v20, %v1182_v19 }
 0x10b   :  { %v1892_v23 = vpop.f32.mrf.mxu0  ;;  %v2000_v24 = vpop.f32.mrf.mxu1 }
 0x10c   :  { %1422 = vst.msk [vmem:[%s3402_s3 + $0xf0] sm:$0xff] %vm1391_vm2, %v823_v21  ;;  %1494 = vst.msk [vmem:[%s3402_s3 + $0x330] sm:$0xff] %vm1391_vm2, %v1183_v22  ;;  %v838_v25 = vadd.f32 %v1892_v23, %v2677_v20  ;;  %v1198_v26 = vadd.f32 %v2000_v24, %v2677_v20 }
 0x10d   :  { %v832_v27 = vpop.f32.mrf.mxu0  ;;  %v1192_v28 = vpop.f32.mrf.mxu1 }
 0x10e   :  { %1425 = vst.msk [vmem:[%s3402_s3 + $0x108] sm:$0xff] %vm1391_vm2, %v838_v25  ;;  %1497 = vst.msk [vmem:[%s3402_s3 + $0x348] sm:$0xff] %vm1391_vm2, %v1198_v26  ;;  %v833_v29 = vadd.f32 %v2677_v20, %v832_v27  ;;  %v1193_v30 = vadd.f32 %v2677_v20, %v1192_v28 }
 0x10f   :  { %v1895_v31 = vpop.f32.mrf.mxu0  ;;  %v2003_v32 = vpop.f32.mrf.mxu1 }
 0x110   :  { %1424 = vst.msk [vmem:[%s3402_s3 + $0x100] sm:$0xff] %vm1391_vm2, %v833_v29  ;;  %1496 = vst.msk [vmem:[%s3402_s3 + $0x340] sm:$0xff] %vm1391_vm2, %v1193_v30  ;;  %v848_v33 = vadd.f32 %v1895_v31, %v2677_v20  ;;  %v1208_v34 = vadd.f32 %v2003_v32, %v2677_v20 }
 0x111   :  { %v842_v35 = vpop.f32.mrf.mxu0  ;;  %v1202_v36 = vpop.f32.mrf.mxu1 }
 0x112   :  { %1427 = vst.msk [vmem:[%s3402_s3 + $0x118] sm:$0xff] %vm1391_vm2, %v848_v33  ;;  %1499 = vst.msk [vmem:[%s3402_s3 + $0x358] sm:$0xff] %vm1391_vm2, %v1208_v34  ;;  %v843_v37 = vadd.f32 %v2677_v20, %v842_v35  ;;  %v1203_v38 = vadd.f32 %v2677_v20, %v1202_v36 }
 0x113   :  { %v1898_v39 = vpop.f32.mrf.mxu0  ;;  %v2006_v40 = vpop.f32.mrf.mxu1 }
 0x114   :  { %1426 = vst.msk [vmem:[%s3402_s3 + $0x110] sm:$0xff] %vm1391_vm2, %v843_v37  ;;  %1498 = vst.msk [vmem:[%s3402_s3 + $0x350] sm:$0xff] %vm1391_vm2, %v1203_v38  ;;  %v858_v41 = vadd.f32 %v1898_v39, %v2677_v20  ;;  %v1218_v42 = vadd.f32 %v2006_v40, %v2677_v20 }
 0x115   :  { %v852_v43 = vpop.f32.mrf.mxu0  ;;  %v1212_v44 = vpop.f32.mrf.mxu1 }
 0x116   :  { %1429 = vst.msk [vmem:[%s3402_s3 + $0x128] sm:$0xff] %vm1391_vm2, %v858_v41  ;;  %1501 = vst.msk [vmem:[%s3402_s3 + $0x368] sm:$0xff] %vm1391_vm2, %v1218_v42  ;;  %v853_v45 = vadd.f32 %v2677_v20, %v852_v43  ;;  %v1213_v46 = vadd.f32 %v2677_v20, %v1212_v44 }
 0x117   :  { %v1901_v47 = vpop.f32.mrf.mxu0  ;;  %v2009_v48 = vpop.f32.mrf.mxu1 }
 0x118   :  { %1428 = vst.msk [vmem:[%s3402_s3 + $0x120] sm:$0xff] %vm1391_vm2, %v853_v45  ;;  %1500 = vst.msk [vmem:[%s3402_s3 + $0x360] sm:$0xff] %vm1391_vm2, %v1213_v46  ;;  %v868_v49 = vadd.f32 %v1901_v47, %v2677_v20  ;;  %v1228_v50 = vadd.f32 %v2009_v48, %v2677_v20 }
 0x119   :  { %v862_v51 = vpop.f32.mrf.mxu0  ;;  %v1222_v52 = vpop.f32.mrf.mxu1 }
 0x11a   :  { %1431 = vst.msk [vmem:[%s3402_s3 + $0x138] sm:$0xff] %vm1391_vm2, %v868_v49  ;;  %1503 = vst.msk [vmem:[%s3402_s3 + $0x378] sm:$0xff] %vm1391_vm2, %v1228_v50  ;;  %v863_v53 = vadd.f32 %v2677_v20, %v862_v51  ;;  %v1223_v54 = vadd.f32 %v2677_v20, %v1222_v52 }
 0x11b   :  { %v1904_v55 = vpop.f32.mrf.mxu0  ;;  %v2012_v56 = vpop.f32.mrf.mxu1 }
 0x11c   :  { %1430 = vst.msk [vmem:[%s3402_s3 + $0x130] sm:$0xff] %vm1391_vm2, %v863_v53  ;;  %1502 = vst.msk [vmem:[%s3402_s3 + $0x370] sm:$0xff] %vm1391_vm2, %v1223_v54  ;;  %v878_v57 = vadd.f32 %v1904_v55, %v2677_v20  ;;  %v1238_v58 = vadd.f32 %v2012_v56, %v2677_v20 }
 0x11d   :  { %v872_v59 = vpop.f32.mrf.mxu0  ;;  %v1232_v60 = vpop.f32.mrf.mxu1 }
 0x11e   :  { %1433 = vst.msk [vmem:[%s3402_s3 + $0x148] sm:$0xff] %vm1391_vm2, %v878_v57  ;;  %1505 = vst.msk [vmem:[%s3402_s3 + $0x388] sm:$0xff] %vm1391_vm2, %v1238_v58  ;;  %v873_v61 = vadd.f32 %v2677_v20, %v872_v59  ;;  %v1233_v62 = vadd.f32 %v2677_v20, %v1232_v60 }
 0x11f   :  { %v1907_v63 = vpop.f32.mrf.mxu0  ;;  %v2015_v0 = vpop.f32.mrf.mxu1 }
 0x120   :  { %1432 = vst.msk [vmem:[%s3402_s3 + $0x140] sm:$0xff] %vm1391_vm2, %v873_v61  ;;  %1504 = vst.msk [vmem:[%s3402_s3 + $0x380] sm:$0xff] %vm1391_vm2, %v1233_v62  ;;  %v888_v1 = vadd.f32 %v1907_v63, %v2677_v20  ;;  %v1248_v2 = vadd.f32 %v2015_v0, %v2677_v20 }
 0x121   :  { %v882_v3 = vpop.f32.mrf.mxu0  ;;  %v1242_v4 = vpop.f32.mrf.mxu1 }
 0x122   :  { %1435 = vst.msk [vmem:[%s3402_s3 + $0x158] sm:$0xff] %vm1391_vm2, %v888_v1  ;;  %1507 = vst.msk [vmem:[%s3402_s3 + $0x398] sm:$0xff] %vm1391_vm2, %v1248_v2  ;;  %v883_v5 = vadd.f32 %v2677_v20, %v882_v3  ;;  %v1243_v6 = vadd.f32 %v2677_v20, %v1242_v4 }
 0x123   :  { %v1910_v7 = vpop.f32.mrf.mxu0  ;;  %v2018_v8 = vpop.f32.mrf.mxu1 }
 0x124   :  { %1434 = vst.msk [vmem:[%s3402_s3 + $0x150] sm:$0xff] %vm1391_vm2, %v883_v5  ;;  %1506 = vst.msk [vmem:[%s3402_s3 + $0x390] sm:$0xff] %vm1391_vm2, %v1243_v6  ;;  %v898_v9 = vadd.f32 %v1910_v7, %v2677_v20  ;;  %v1258_v10 = vadd.f32 %v2018_v8, %v2677_v20 }
 0x125   :  { %v892_v11 = vpop.f32.mrf.mxu0  ;;  %v1252_v12 = vpop.f32.mrf.mxu1 }
 0x126   :  { %1437 = vst.msk [vmem:[%s3402_s3 + $0x168] sm:$0xff] %vm1391_vm2, %v898_v9  ;;  %1509 = vst.msk [vmem:[%s3402_s3 + $0x3a8] sm:$0xff] %vm1391_vm2, %v1258_v10  ;;  %v893_v13 = vadd.f32 %v2677_v20, %v892_v11  ;;  %v1253_v14 = vadd.f32 %v2677_v20, %v1252_v12 }
 0x127   :  { %v1913_v15 = vpop.f32.mrf.mxu0  ;;  %v2021_v16 = vpop.f32.mrf.mxu1 }
 0x128   :  { %1436 = vst.msk [vmem:[%s3402_s3 + $0x160] sm:$0xff] %vm1391_vm2, %v893_v13  ;;  %1508 = vst.msk [vmem:[%s3402_s3 + $0x3a0] sm:$0xff] %vm1391_vm2, %v1253_v14  ;;  %v908_v17 = vadd.f32 %v1913_v15, %v2677_v20  ;;  %v1268_v18 = vadd.f32 %v2021_v16, %v2677_v20 }
 0x129   :  { %v902_v19 = vpop.f32.mrf.mxu0  ;;  %v1262_v21 = vpop.f32.mrf.mxu1 }
 0x12a   :  { %1439 = vst.msk [vmem:[%s3402_s3 + $0x178] sm:$0xff] %vm1391_vm2, %v908_v17  ;;  %1511 = vst.msk [vmem:[%s3402_s3 + $0x3b8] sm:$0xff] %vm1391_vm2, %v1268_v18  ;;  %v903_v22 = vadd.f32 %v2677_v20, %v902_v19  ;;  %v1263_v23 = vadd.f32 %v2677_v20, %v1262_v21 }
 0x12b   :  { %v1916_v24 = vpop.f32.mrf.mxu0  ;;  %v2024_v25 = vpop.f32.mrf.mxu1 }
 0x12c   :  { %1438 = vst.msk [vmem:[%s3402_s3 + $0x170] sm:$0xff] %vm1391_vm2, %v903_v22  ;;  %1510 = vst.msk [vmem:[%s3402_s3 + $0x3b0] sm:$0xff] %vm1391_vm2, %v1263_v23  ;;  %v918_v26 = vadd.f32 %v1916_v24, %v2677_v20  ;;  %v1278_v27 = vadd.f32 %v2024_v25, %v2677_v20 }
 0x12d   :  { %v912_v28 = vpop.f32.mrf.mxu0  ;;  %v1272_v29 = vpop.f32.mrf.mxu1 }
 0x12e   :  { %1441 = vst.msk [vmem:[%s3402_s3 + $0x188] sm:$0xff] %vm1391_vm2, %v918_v26  ;;  %1513 = vst.msk [vmem:[%s3402_s3 + $0x3c8] sm:$0xff] %vm1391_vm2, %v1278_v27  ;;  %v913_v30 = vadd.f32 %v2677_v20, %v912_v28  ;;  %v1273_v31 = vadd.f32 %v2677_v20, %v1272_v29 }
 0x12f   :  { %v1919_v32 = vpop.f32.mrf.mxu0  ;;  %v2027_v33 = vpop.f32.mrf.mxu1 }
 0x130   :  { %1440 = vst.msk [vmem:[%s3402_s3 + $0x180] sm:$0xff] %vm1391_vm2, %v913_v30  ;;  %1512 = vst.msk [vmem:[%s3402_s3 + $0x3c0] sm:$0xff] %vm1391_vm2, %v1273_v31  ;;  %v928_v34 = vadd.f32 %v1919_v32, %v2677_v20  ;;  %v1288_v35 = vadd.f32 %v2027_v33, %v2677_v20 }
 0x131   :  { %v922_v36 = vpop.f32.mrf.mxu0  ;;  %v1282_v37 = vpop.f32.mrf.mxu1 }
 0x132   :  { %1443 = vst.msk [vmem:[%s3402_s3 + $0x198] sm:$0xff] %vm1391_vm2, %v928_v34  ;;  %1515 = vst.msk [vmem:[%s3402_s3 + $0x3d8] sm:$0xff] %vm1391_vm2, %v1288_v35  ;;  %v923_v38 = vadd.f32 %v2677_v20, %v922_v36  ;;  %v1283_v39 = vadd.f32 %v2677_v20, %v1282_v37 }
 0x133   :  { %v1922_v40 = vpop.f32.mrf.mxu0  ;;  %v2030_v41 = vpop.f32.mrf.mxu1 }
 0x134   :  { %1442 = vst.msk [vmem:[%s3402_s3 + $0x190] sm:$0xff] %vm1391_vm2, %v923_v38  ;;  %1514 = vst.msk [vmem:[%s3402_s3 + $0x3d0] sm:$0xff] %vm1391_vm2, %v1283_v39  ;;  %v938_v42 = vadd.f32 %v1922_v40, %v2677_v20  ;;  %v1298_v43 = vadd.f32 %v2030_v41, %v2677_v20 }
 0x135   :  { %v932_v44 = vpop.f32.mrf.mxu0  ;;  %v1292_v45 = vpop.f32.mrf.mxu1 }
 0x136   :  { %1445 = vst.msk [vmem:[%s3402_s3 + $0x1a8] sm:$0xff] %vm1391_vm2, %v938_v42  ;;  %1517 = vst.msk [vmem:[%s3402_s3 + $0x3e8] sm:$0xff] %vm1391_vm2, %v1298_v43  ;;  %v933_v46 = vadd.f32 %v2677_v20, %v932_v44  ;;  %v1293_v47 = vadd.f32 %v2677_v20, %v1292_v45 }
 0x137   :  { %v1925_v48 = vpop.f32.mrf.mxu0  ;;  %v2033_v49 = vpop.f32.mrf.mxu1 }
 0x138   :  { %1444 = vst.msk [vmem:[%s3402_s3 + $0x1a0] sm:$0xff] %vm1391_vm2, %v933_v46  ;;  %1516 = vst.msk [vmem:[%s3402_s3 + $0x3e0] sm:$0xff] %vm1391_vm2, %v1293_v47  ;;  %v948_v50 = vadd.f32 %v1925_v48, %v2677_v20  ;;  %v1308_v51 = vadd.f32 %v2033_v49, %v2677_v20 }
 0x139   :  { %v942_v52 = vpop.f32.mrf.mxu0  ;;  %v1302_v53 = vpop.f32.mrf.mxu1 }
 0x13a   :  { %1447 = vst.msk [vmem:[%s3402_s3 + $0x1b8] sm:$0xff] %vm1391_vm2, %v948_v50  ;;  %1519 = vst.msk [vmem:[%s3402_s3 + $0x3f8] sm:$0xff] %vm1391_vm2, %v1308_v51  ;;  %v943_v54 = vadd.f32 %v2677_v20, %v942_v52  ;;  %v1303_v55 = vadd.f32 %v2677_v20, %v1302_v53 }
 0x13b   :  { %v1928_v56 = vpop.f32.mrf.mxu0  ;;  %v2036_v57 = vpop.f32.mrf.mxu1 }
 0x13c   :  { %1446 = vst.msk [vmem:[%s3402_s3 + $0x1b0] sm:$0xff] %vm1391_vm2, %v943_v54  ;;  %1518 = vst.msk [vmem:[%s3402_s3 + $0x3f0] sm:$0xff] %vm1391_vm2, %v1303_v55  ;;  %v958_v58 = vadd.f32 %v1928_v56, %v2677_v20  ;;  %v1318_v59 = vadd.f32 %v2036_v57, %v2677_v20 }
 0x13d   :  { %v952_v60 = vpop.f32.mrf.mxu0  ;;  %v1312_v61 = vpop.f32.mrf.mxu1 }
 0x13e   :  { %1449 = vst.msk [vmem:[%s3402_s3 + $0x1c8] sm:$0xff] %vm1391_vm2, %v958_v58  ;;  %1521 = vst.msk [vmem:[%s3402_s3 + $0x408] sm:$0xff] %vm1391_vm2, %v1318_v59  ;;  %v953_v62 = vadd.f32 %v2677_v20, %v952_v60  ;;  %v1313_v63 = vadd.f32 %v2677_v20, %v1312_v61 }
 0x13f   :  { %v1931_v0 = vpop.f32.mrf.mxu0  ;;  %v2039_v1 = vpop.f32.mrf.mxu1 }
 0x140   :  { %1448 = vst.msk [vmem:[%s3402_s3 + $0x1c0] sm:$0xff] %vm1391_vm2, %v953_v62  ;;  %1520 = vst.msk [vmem:[%s3402_s3 + $0x400] sm:$0xff] %vm1391_vm2, %v1313_v63  ;;  %v968_v2 = vadd.f32 %v1931_v0, %v2677_v20  ;;  %v1328_v3 = vadd.f32 %v2039_v1, %v2677_v20 }
 0x141   :  { %v962_v4 = vpop.f32.mrf.mxu0  ;;  %v1322_v5 = vpop.f32.mrf.mxu1 }
 0x142   :  { %1451 = vst.msk [vmem:[%s3402_s3 + $0x1d8] sm:$0xff] %vm1391_vm2, %v968_v2  ;;  %1523 = vst.msk [vmem:[%s3402_s3 + $0x418] sm:$0xff] %vm1391_vm2, %v1328_v3  ;;  %v963_v6 = vadd.f32 %v2677_v20, %v962_v4  ;;  %v1323_v7 = vadd.f32 %v2677_v20, %v1322_v5 }
 0x143   :  { %v1934_v8 = vpop.f32.mrf.mxu0  ;;  %v2042_v9 = vpop.f32.mrf.mxu1 }
 0x144   :  { %1450 = vst.msk [vmem:[%s3402_s3 + $0x1d0] sm:$0xff] %vm1391_vm2, %v963_v6  ;;  %1522 = vst.msk [vmem:[%s3402_s3 + $0x410] sm:$0xff] %vm1391_vm2, %v1323_v7  ;;  %v978_v10 = vadd.f32 %v1934_v8, %v2677_v20  ;;  %v1338_v11 = vadd.f32 %v2042_v9, %v2677_v20 }
 0x145   :  { %v972_v12 = vpop.f32.mrf.mxu0  ;;  %v1332_v13 = vpop.f32.mrf.mxu1 }
 0x146   :  { %1453 = vst.msk [vmem:[%s3402_s3 + $0x1e8] sm:$0xff] %vm1391_vm2, %v978_v10  ;;  %1525 = vst.msk [vmem:[%s3402_s3 + $0x428] sm:$0xff] %vm1391_vm2, %v1338_v11  ;;  %v973_v14 = vadd.f32 %v2677_v20, %v972_v12  ;;  %v1333_v15 = vadd.f32 %v2677_v20, %v1332_v13 }
 0x147   :  { %v1937_v16 = vpop.f32.mrf.mxu0  ;;  %v2045_v17 = vpop.f32.mrf.mxu1 }
 0x148   :  { %1452 = vst.msk [vmem:[%s3402_s3 + $0x1e0] sm:$0xff] %vm1391_vm2, %v973_v14  ;;  %1524 = vst.msk [vmem:[%s3402_s3 + $0x420] sm:$0xff] %vm1391_vm2, %v1333_v15  ;;  %v988_v18 = vadd.f32 %v1937_v16, %v2677_v20  ;;  %v1348_v19 = vadd.f32 %v2045_v17, %v2677_v20 }
 0x149   :  { %v982_v21 = vpop.f32.mrf.mxu0  ;;  %v1342_v22 = vpop.f32.mrf.mxu1 }
 0x14a   :  { %1455 = vst.msk [vmem:[%s3402_s3 + $0x1f8] sm:$0xff] %vm1391_vm2, %v988_v18  ;;  %1527 = vst.msk [vmem:[%s3402_s3 + $0x438] sm:$0xff] %vm1391_vm2, %v1348_v19  ;;  %v983_v23 = vadd.f32 %v2677_v20, %v982_v21  ;;  %v1343_v24 = vadd.f32 %v2677_v20, %v1342_v22 }
 0x14b   :  { %v1940_v25 = vpop.f32.mrf.mxu0  ;;  %v2048_v26 = vpop.f32.mrf.mxu1 }
 0x14c   :  { %1454 = vst.msk [vmem:[%s3402_s3 + $0x1f0] sm:$0xff] %vm1391_vm2, %v983_v23  ;;  %1526 = vst.msk [vmem:[%s3402_s3 + $0x430] sm:$0xff] %vm1391_vm2, %v1343_v24  ;;  %v998_v27 = vadd.f32 %v1940_v25, %v2677_v20  ;;  %v1358_v28 = vadd.f32 %v2048_v26, %v2677_v20 }
 0x14d   :  { %v992_v29 = vpop.f32.mrf.mxu0  ;;  %v1352_v30 = vpop.f32.mrf.mxu1 }
 0x14e   :  { %1457 = vst.msk [vmem:[%s3402_s3 + $0x208] sm:$0xff] %vm1391_vm2, %v998_v27  ;;  %1529 = vst.msk [vmem:[%s3402_s3 + $0x448] sm:$0xff] %vm1391_vm2, %v1358_v28  ;;  %v993_v31 = vadd.f32 %v2677_v20, %v992_v29  ;;  %v1353_v32 = vadd.f32 %v2677_v20, %v1352_v30 }
 0x14f   :  { %v1943_v33 = vpop.f32.mrf.mxu0  ;;  %v2051_v34 = vpop.f32.mrf.mxu1 }
 0x150   :  { %1456 = vst.msk [vmem:[%s3402_s3 + $0x200] sm:$0xff] %vm1391_vm2, %v993_v31  ;;  %1528 = vst.msk [vmem:[%s3402_s3 + $0x440] sm:$0xff] %vm1391_vm2, %v1353_v32  ;;  %v1008_v35 = vadd.f32 %v1943_v33, %v2677_v20  ;;  %v1368_v36 = vadd.f32 %v2051_v34, %v2677_v20 }
 0x151   :  { %v1002_v37 = vpop.f32.mrf.mxu0  ;;  %v1362_v38 = vpop.f32.mrf.mxu1 }
 0x152   :  { %1459 = vst.msk [vmem:[%s3402_s3 + $0x218] sm:$0xff] %vm1391_vm2, %v1008_v35  ;;  %1531 = vst.msk [vmem:[%s3402_s3 + $0x458] sm:$0xff] %vm1391_vm2, %v1368_v36  ;;  %v1003_v39 = vadd.f32 %v2677_v20, %v1002_v37  ;;  %v1363_v40 = vadd.f32 %v2677_v20, %v1362_v38 }
 0x153   :  { %v1946_v41 = vpop.f32.mrf.mxu0  ;;  %v2054_v42 = vpop.f32.mrf.mxu1 }
 0x154   :  { %1458 = vst.msk [vmem:[%s3402_s3 + $0x210] sm:$0xff] %vm1391_vm2, %v1003_v39  ;;  %1530 = vst.msk [vmem:[%s3402_s3 + $0x450] sm:$0xff] %vm1391_vm2, %v1363_v40  ;;  %v1018_v43 = vadd.f32 %v1946_v41, %v2677_v20  ;;  %v1378_v44 = vadd.f32 %v2054_v42, %v2677_v20 }
 0x155   :  { %v1012_v45 = vpop.f32.mrf.mxu0  ;;  %v1372_v46 = vpop.f32.mrf.mxu1 }
 0x156   :  { %1461 = vst.msk [vmem:[%s3402_s3 + $0x228] sm:$0xff] %vm1391_vm2, %v1018_v43  ;;  %1533 = vst.msk [vmem:[%s3402_s3 + $0x468] sm:$0xff] %vm1391_vm2, %v1378_v44  ;;  %v1013_v47 = vadd.f32 %v2677_v20, %v1012_v45  ;;  %v1373_v48 = vadd.f32 %v2677_v20, %v1372_v46 }
 0x157   :  { %v1949_v49 = vpop.f32.mrf.mxu0  ;;  %v2057_v50 = vpop.f32.mrf.mxu1 }
 0x158   :  { %1460 = vst.msk [vmem:[%s3402_s3 + $0x220] sm:$0xff] %vm1391_vm2, %v1013_v47  ;;  %1532 = vst.msk [vmem:[%s3402_s3 + $0x460] sm:$0xff] %vm1391_vm2, %v1373_v48  ;;  %v1028_v51 = vadd.f32 %v1949_v49, %v2677_v20  ;;  %v1388_v52 = vadd.f32 %v2057_v50, %v2677_v20 }
 0x159   :  { %v1022_v53 = vpop.f32.mrf.mxu0  ;;  %v1382_v54 = vpop.f32.mrf.mxu1 }
 0x15a   :  { %1463 = vst.msk [vmem:[%s3402_s3 + $0x238] sm:$0xff] %vm1391_vm2, %v1028_v51  ;;  %1535 = vst.msk [vmem:[%s3402_s3 + $0x478] sm:$0xff] %vm1391_vm2, %v1388_v52  ;;  %v1023_v55 = vadd.f32 %v2677_v20, %v1022_v53  ;;  %v1383_v56 = vadd.f32 %v2677_v20, %v1382_v54 }
 0x15c   :  { %1462 = vst.msk [vmem:[%s3402_s3 + $0x230] sm:$0xff] %vm1391_vm2, %v1023_v55  ;;  %1534 = vst.msk [vmem:[%s3402_s3 + $0x470] sm:$0xff] %vm1391_vm2, %v1383_v56 }

// kernel: lenet_forward.6
= control target key start
LH: loop header
LB: loop body
LE: loop exit
PB: predicated region body
PF: predicated region fallthrough
CT: control target
= control target key end

     0   :  { %vm47_vm0 = vcmask 1045504   ;;  %vm51_vm1 = vcmask 259072   ;;  %v107_v29 = vmov 0   ;;  %s201_s0 = inlined_call_operand.vmem [shape: f32[6,288], index: 0, kind: input, shape index: {}]   ;;  %s202_s1 = inlined_call_operand.vmem [shape: f32[6,288], index: 1, kind: input, shape index: {}]   ;;  %s203_s2 = inlined_call_operand.vmem [shape: f32[6,288], index: 2, kind: input, shape index: {}]   ;;  %s204_s3 = inlined_call_operand.vmem [shape: f32[6,288], index: 3, kind: input, shape index: {}]   ;;  %s205_s4 = inlined_call_operand.vmem [shape: f32[6,1], index: 4, kind: input, shape index: {}]   ;;  %s206_s5 = inlined_call_operand.vmem [shape: f32[6,1], index: 5, kind: input, shape index: {}]   ;;  %s207_s6 = inlined_call_operand.vmem [shape: f32[6,288], index: 6, kind: output, shape index: {}]  }
   0x1   :  { %v23_v0 = vld [vmem:[%s201_s0] sm:$0x3f]  ;;  %v24_v1 = vld [vmem:[%s201_s0 + $0x8] sm:$0x3f]  ;;  %v25_v2 = vld [vmem:[%s201_s0 + $0x10] sm:$0x3f]  ;;  %103 = vset.pattern.permute.xlu1 %v107_v29  ;;  %104 = vset.pattern.permute.xlu0 %v107_v29 }
   0x2   :  { %v26_v3 = vld [vmem:[%s202_s1] sm:$0x3f]  ;;  %v27_v4 = vld [vmem:[%s202_s1 + $0x8] sm:$0x3f]  ;;  %v28_v5 = vld [vmem:[%s202_s1 + $0x10] sm:$0x3f] }
   0x3   :  { %v29_v6 = vmax.f32 %v23_v0, %v26_v3  ;;  %v30_v7 = vmax.f32 %v24_v1, %v27_v4  ;;  %v31_v8 = vmax.f32 %v25_v2, %v28_v5  ;;  %v32_v9 = vld [vmem:[%s203_s2] sm:$0x3f]  ;;  %v33_v10 = vld [vmem:[%s203_s2 + $0x8] sm:$0x3f]  ;;  %v34_v11 = vld [vmem:[%s203_s2 + $0x10] sm:$0x3f] }
   0x4   :  { %v35_v12 = vld [vmem:[%s204_s3] sm:$0x3f]  ;;  %v36_v13 = vld [vmem:[%s204_s3 + $0x8] sm:$0x3f]  ;;  %v37_v14 = vld [vmem:[%s204_s3 + $0x10] sm:$0x3f] }
   0x5   :  { %v38_v15 = vmax.f32 %v32_v9, %v35_v12  ;;  %v39_v16 = vmax.f32 %v33_v10, %v36_v13  ;;  %v40_v17 = vmax.f32 %v34_v11, %v37_v14  ;;  %v77_v30 = vld [vmem:[%s205_s4] sm:$0x3f] }
   0x6   :  { %80 = vperm.xlu1 %103, %v77_v30   ;;  %v86_v31 = vld [vmem:[%s206_s5] sm:$0x3f] }
   0x7   :  { %v41_v18 = vmax.f32 %v29_v6, %v38_v15  ;;  %v42_v19 = vmax.f32 %v30_v7, %v39_v16  ;;  %v43_v20 = vmax.f32 %v31_v8, %v40_v17 }
   0x9   :  { %v44_v21 = vmax.f32 %v41_v18, 0.0  ;;  %v45_v22 = vmax.f32 %v42_v19, 0.0  ;;  %v46_v23 = vmax.f32 %v43_v20, 0.0 }
   0xa   :  { %89 = vperm.xlu1 %103, %v86_v31  }
   0xb   :  { %v48_v24 = vsel %vm47_vm0, %v44_v21, 0.0  ;;  %v49_v25 = vsel %vm47_vm0, %v45_v22, 0.0  ;;  %v52_v26 = vsel %vm51_vm1, %v46_v23, 0.0 }
   0xc   :  { %v50_v27 = vadd.f32 %v49_v25, %v48_v24 }
   0xe   :  { %v53_v28 = vadd.f32 %v52_v26, %v50_v27 }
  0x10   :  { %54 = vadd.xlane.f32.xlu0 %v53_v28 }
  0x81   :  { %v81_v48 = vpop.permute.xlu1 %80 }
  0x85   :  { %v90_v56 = vpop.permute.xlu1 %89 }
  0x99   :  { %v55_v32 = vpop.xlane.xlu0 %54 }
  0x9a   :  { %v57_v33 = vmul.f32 0.0034722222, %v55_v32 }
  0x9c   :  { %v58_v34 = vsub.f32 %v44_v21, %v57_v33  ;;  %v59_v35 = vsub.f32 %v45_v22, %v57_v33  ;;  %v60_v36 = vsub.f32 %v46_v23, %v57_v33 }
  0x9e   :  { %v61_v37 = vmul.f32 %v58_v34, %v58_v34  ;;  %v62_v38 = vmul.f32 %v59_v35, %v59_v35  ;;  %v63_v39 = vmul.f32 %v60_v36, %v60_v36 }
  0xa0   :  { %v64_v40 = vsel %vm47_vm0, %v61_v37, 0.0  ;;  %v65_v41 = vsel %vm47_vm0, %v62_v38, 0.0  ;;  %v67_v43 = vsel %vm51_vm1, %v63_v39, 0.0 }
  0xa1   :  { %v66_v42 = vadd.f32 %v65_v41, %v64_v40 }
  0xa3   :  { %v68_v44 = vadd.f32 %v67_v43, %v66_v42 }
  0xa5   :  { %69 = vadd.xlane.f32.xlu0 %v68_v44 }
 0x12e   :  { %v70_v45 = vpop.xlane.xlu0 %69 }
 0x12f   :  { %v71_v46 = vmul.f32 0.0034722222, %v70_v45 }
 0x131   :  { %v72_v47 = vadd.f32 1e-05, %v71_v46 }
 0x133   :  { %105 = vrsqrt.f32 %v72_v47 }
 0x140   :  { %v106_v49 = vpop.eup %105 }
 0x141   :  { %v74_v50 = vmul.f32 %v106_v49, %v58_v34  ;;  %v75_v51 = vmul.f32 %v106_v49, %v59_v35  ;;  %v76_v52 = vmul.f32 %v106_v49, %v60_v36 }
 0x143   :  { %v83_v53 = vmul.f32 %v81_v48, %v74_v50  ;;  %v84_v54 = vmul.f32 %v81_v48, %v75_v51  ;;  %v85_v55 = vmul.f32 %v81_v48, %v76_v52 }
 0x145   :  { %v92_v57 = vadd.f32 %v90_v56, %v83_v53  ;;  %v93_v58 = vadd.f32 %v90_v56, %v84_v54  ;;  %v94_v59 = vadd.f32 %v90_v56, %v85_v55 }
 0x147   :  { %95 = vst [vmem:[%s207_s6] sm:$0x3f] %v92_v57  ;;  %96 = vst [vmem:[%s207_s6 + $0x8] sm:$0x3f] %v93_v58 }
 0x148   :  { %97 = vst.msk [vmem:[%s207_s6 + $0x10] sm:$0x3f] %vm51_vm1, %v94_v59 }

// kernel: lenet_forward.8
= control target key start
LH: loop header
LB: loop body
LE: loop exit
PB: predicated region body
PF: predicated region fallthrough
CT: control target
= control target key end

     0   :  { %v108_v3 = vmov 0   ;;  %vm39_vm0 = vcmask 261120   ;;  %s192_s0 = inlined_call_operand.vmem [shape: f32[16,32], index: 0, kind: input, shape index: {}]   ;;  %s193_s1 = inlined_call_operand.vmem [shape: f32[16,32], index: 1, kind: input, shape index: {}]   ;;  %s194_s2 = inlined_call_operand.vmem [shape: f32[16,32], index: 2, kind: input, shape index: {}]   ;;  %s195_s3 = inlined_call_operand.vmem [shape: f32[16,32], index: 3, kind: input, shape index: {}]   ;;  %s196_s4 = inlined_call_operand.vmem [shape: f32[16,1], index: 4, kind: input, shape index: {}]   ;;  %s197_s5 = inlined_call_operand.vmem [shape: f32[16,1], index: 5, kind: input, shape index: {}]   ;;  %s198_s6 = inlined_call_operand.vmem [shape: f32[16,32], index: 6, kind: output, shape index: {}]  }
   0x1   :  { %v23_v0 = vld [vmem:[%s192_s0] sm:$0xff]  ;;  %103 = vset.pattern.permute.xlu1 %v108_v3  ;;  %102 = vset.pattern.permute.xlu0 %v108_v3  ;;  %v24_v6 = vld [vmem:[%s192_s0 + $0x8] sm:$0xff] }
   0x2   :  { %v25_v1 = vld [vmem:[%s193_s1] sm:$0xff]  ;;  %v26_v7 = vld [vmem:[%s193_s1 + $0x8] sm:$0xff] }
   0x3   :  { %v29_v2 = vld [vmem:[%s194_s2] sm:$0xff]  ;;  %v27_v4 = vmax.f32 %v23_v0, %v25_v1  ;;  %v28_v9 = vmax.f32 %v24_v6, %v26_v7  ;;  %v30_v10 = vld [vmem:[%s194_s2 + $0x8] sm:$0xff] }
   0x4   :  { %v31_v5 = vld [vmem:[%s195_s3] sm:$0xff]  ;;  %v32_v11 = vld [vmem:[%s195_s3 + $0x8] sm:$0xff] }
   0x5   :  { %v33_v8 = vmax.f32 %v29_v2, %v31_v5  ;;  %v68_v12 = vld [vmem:[%s196_s4 + $0x8] sm:$0xff]  ;;  %v34_v13 = vmax.f32 %v30_v10, %v32_v11  ;;  %v81_v15 = vld [vmem:[%s197_s5] sm:$0xff] }
   0x6   :  { %76 = vperm.xlu1 %103, %v68_v12   ;;  %v67_v21 = vld [vmem:[%s196_s4] sm:$0xff]  ;;  %v82_v32 = vld [vmem:[%s197_s5 + $0x8] sm:$0xff] }
   0x7   :  { %v35_v14 = vmax.f32 %v27_v4, %v33_v8  ;;  %v36_v16 = vmax.f32 %v28_v9, %v34_v13 }
   0x9   :  { %v37_v17 = vmax.f32 %v35_v14, 0.0  ;;  %v38_v18 = vmax.f32 %v36_v16, 0.0 }
   0xa   :  { %85 = vperm.xlu1 %103, %v81_v15  }
   0xb   :  { %v40_v19 = vsel %vm39_vm0, %v37_v17, 0.0  ;;  %v43_v20 = vsel %vm39_vm0, %v38_v18, 0.0 }
   0xc   :  { %41 = vadd.xlane.f32.xlu0 %v40_v19 }
  0x10   :  { %44 = vadd.xlane.f32.xlu0 %v43_v20 }
  0x26   :  { %71 = vperm.xlu0 %102, %v67_v21  }
  0x81   :  { %v77_v33 = vpop.permute.xlu1 %76 }
  0x85   :  { %v86_v34 = vpop.permute.xlu1 %85 }
  0x95   :  { %v42_v22 = vpop.xlane.xlu0 %41 }
  0x96   :  { %v47_v23 = vmul.f32 0.03125, %v42_v22 }
  0x98   :  { %v49_v24 = vsub.f32 %v37_v17, %v47_v23 }
  0x99   :  { %v45_v25 = vpop.xlane.xlu0 %44 }
  0x9a   :  { %v48_v26 = vmul.f32 0.03125, %v45_v25  ;;  %v51_v27 = vmul.f32 %v49_v24, %v49_v24 }
  0x9c   :  { %v50_v28 = vsub.f32 %v38_v18, %v48_v26  ;;  %v53_v29 = vsel %vm39_vm0, %v51_v27, 0.0 }
  0x9d   :  { %54 = vadd.xlane.f32.xlu1 %v53_v29 }
  0x9e   :  { %v52_v30 = vmul.f32 %v50_v28, %v50_v28 }
  0xa0   :  { %v56_v31 = vsel %vm39_vm0, %v52_v30, 0.0 }
  0xa1   :  { %57 = vadd.xlane.f32.xlu1 %v56_v31  ;;  %v72_v42 = vpop.permute.xlu0 %71 }
  0xb2   :  { %90 = vperm.xlu1 %103, %v82_v32  }
 0x126   :  { %v55_v35 = vpop.xlane.xlu1 %54 }
 0x127   :  { %v59_v36 = vmul.f32 0.03125, %v55_v35 }
 0x129   :  { %v61_v37 = vadd.f32 1e-05, %v59_v36 }
 0x12a   :  { %v58_v38 = vpop.xlane.xlu1 %57 }
 0x12b   :  { %104 = vrsqrt.f32 %v61_v37  ;;  %v60_v39 = vmul.f32 0.03125, %v58_v38 }
 0x12d   :  { %v62_v40 = vadd.f32 1e-05, %v60_v39 }
 0x12e   :  { %v91_v49 = vpop.permute.xlu1 %90 }
 0x12f   :  { %106 = vrsqrt.f32 %v62_v40 }
 0x138   :  { %v105_v41 = vpop.eup %104 }
 0x139   :  { %v65_v43 = vmul.f32 %v105_v41, %v49_v24 }
 0x13b   :  { %v79_v44 = vmul.f32 %v72_v42, %v65_v43 }
 0x13c   :  { %v107_v45 = vpop.eup %106 }
 0x13d   :  { %v66_v46 = vmul.f32 %v107_v45, %v50_v28  ;;  %v93_v47 = vadd.f32 %v86_v34, %v79_v44 }
 0x13f   :  { %v80_v48 = vmul.f32 %v77_v33, %v66_v46  ;;  %95 = vst.msk [vmem:[%s198_s6] sm:$0xff] %vm39_vm0, %v93_v47 }
 0x141   :  { %v94_v50 = vadd.f32 %v91_v49, %v80_v48 }
 0x143   :  { %96 = vst.msk [vmem:[%s198_s6 + $0x8] sm:$0xff] %vm39_vm0, %v94_v50 }

// kernel: lenet_forward.7
= control target key start
LH: loop header
LB: loop body
LE: loop exit
PB: predicated region body
PF: predicated region fallthrough
CT: control target
= control target key end

     0   :  { %v348_v0 = vmov 0.0   ;;  %vm121_vm0 = vcmask 1045504   ;;  %vm72_vm1 = vcmask 179200   ;;  %vm270_vm2 = vcmask 130048   ;;  %s643_s1 = inlined_call_operand.vmem [shape: f32[150,16], index: 1, kind: input, shape index: {}]   ;;  %s644_s0 = inlined_call_operand.vmem [shape: f32[128,150], index: 0, kind: input, shape index: {}]   ;;  %s645_s2 = inlined_call_operand.vmem [shape: f32[1,16], index: 2, kind: input, shape index: {}]   ;;  %s646_s3 = inlined_call_operand.vmem [shape: f32[128,16], index: 3, kind: output, shape index: {}]  }
   0x1   :  { %125 = vmatprep.subr.mxu0 %v348_v0  ;;  %309 = vmatprep.subr.mxu1 %v348_v0  ;;  %v61_v1 = vld [vmem:[%s643_s1 + $0x78] sm:$0xff]  ;;  %v60_v2 = vld [vmem:[%s643_s1 + $0x70] sm:$0xff]  ;;  %v59_v3 = vld [vmem:[%s643_s1 + $0x68] sm:$0xff] }
   0x2   :  { %126 = vmatpush1.msra.mxu0 %v61_v1  ;;  %328 = vmatpush1.msra.mxu1 %v61_v1  ;;  %v58_v4 = vld [vmem:[%s643_s1 + $0x60] sm:$0xff]  ;;  %v57_v5 = vld [vmem:[%s643_s1 + $0x58] sm:$0xff]  ;;  %v56_v6 = vld [vmem:[%s643_s1 + $0x50] sm:$0xff] }
   0x3   :  { %127 = vmatprep.subr.mxu0 %v348_v0  ;;  %310 = vmatprep.subr.mxu1 %v348_v0  ;;  %v55_v7 = vld [vmem:[%s643_s1 + $0x48] sm:$0xff]  ;;  %v54_v8 = vld [vmem:[%s643_s1 + $0x40] sm:$0xff]  ;;  %v53_v9 = vld [vmem:[%s643_s1 + $0x38] sm:$0xff] }
   0x4   :  { %128 = vmatpush1.msra.mxu0 %v60_v2  ;;  %329 = vmatpush1.msra.mxu1 %v60_v2  ;;  %v52_v10 = vld [vmem:[%s643_s1 + $0x30] sm:$0xff]  ;;  %v51_v11 = vld [vmem:[%s643_s1 + $0x28] sm:$0xff]  ;;  %v50_v12 = vld [vmem:[%s643_s1 + $0x20] sm:$0xff] }
   0x5   :  { %129 = vmatprep.subr.mxu0 %v348_v0  ;;  %311 = vmatprep.subr.mxu1 %v348_v0  ;;  %v49_v13 = vld [vmem:[%s643_s1 + $0x18] sm:$0xff]  ;;  %v48_v14 = vld [vmem:[%s643_s1 + $0x10] sm:$0xff]  ;;  %v47_v15 = vld [vmem:[%s643_s1 + $0x8] sm:$0xff] }
   0x6   :  { %130 = vmatpush1.msra.mxu0 %v59_v3  ;;  %330 = vmatpush1.msra.mxu1 %v59_v3  ;;  %v46_v16 = vld [vmem:[%s643_s1] sm:$0xff]  ;;  %v64_v17 = vld [vmem:[%s643_s1 + $0x90] sm:$0x3f]  ;;  %v63_v18 = vld [vmem:[%s643_s1 + $0x88] sm:$0xff] }
   0x7   :  { %131 = vmatprep.subr.mxu0 %v348_v0  ;;  %312 = vmatprep.subr.mxu1 %v348_v0  ;;  %v62_v19 = vld [vmem:[%s643_s1 + $0x80] sm:$0xff]  ;;  %v15_v20 = vld [vmem:[%s644_s0 + $0x8] sm:$0xff]  ;;  %v17_v24 = vld [vmem:[%s644_s0 + $0x18] sm:$0xff] }
   0x8   :  { %132 = vmatpush1.msra.mxu0 %v58_v4  ;;  %331 = vmatpush1.msra.mxu1 %v58_v4  ;;  %v31_v21 = vld [vmem:[%s644_s0 + $0x88] sm:$0xff]  ;;  %v14_v22 = vld [vmem:[%s644_s0] sm:$0xff]  ;;  %v33_v25 = vld [vmem:[%s644_s0 + $0x98] sm:$0xff] }
   0x9   :  { %133 = vmatprep.subr.mxu0 %v348_v0  ;;  %313 = vmatprep.subr.mxu1 %v348_v0  ;;  %v30_v23 = vld [vmem:[%s644_s0 + $0x80] sm:$0xff]  ;;  %v16_v26 = vld [vmem:[%s644_s0 + $0x10] sm:$0xff]  ;;  %v19_v28 = vld [vmem:[%s644_s0 + $0x28] sm:$0xff] }
   0xa   :  { %134 = vmatpush1.msra.mxu0 %v57_v5  ;;  %332 = vmatpush1.msra.mxu1 %v57_v5  ;;  %v32_v27 = vld [vmem:[%s644_s0 + $0x90] sm:$0xff]  ;;  %v35_v29 = vld [vmem:[%s644_s0 + $0xa8] sm:$0xff]  ;;  %v18_v30 = vld [vmem:[%s644_s0 + $0x20] sm:$0xff] }
   0xb   :  { %135 = vmatprep.subr.mxu0 %v348_v0  ;;  %314 = vmatprep.subr.mxu1 %v348_v0  ;;  %v34_v31 = vld [vmem:[%s644_s0 + $0xa0] sm:$0xff]  ;;  %v21_v32 = vld [vmem:[%s644_s0 + $0x38] sm:$0xff]  ;;  %v20_v34 = vld [vmem:[%s644_s0 + $0x30] sm:$0xff] }
   0xc   :  { %136 = vmatpush1.msra.mxu0 %v56_v6  ;;  %333 = vmatpush1.msra.mxu1 %v56_v6  ;;  %v37_v33 = vld [vmem:[%s644_s0 + $0xb8] sm:$0xff]  ;;  %v36_v35 = vld [vmem:[%s644_s0 + $0xb0] sm:$0xff]  ;;  %v23_v36 = vld [vmem:[%s644_s0 + $0x48] sm:$0xff] }
   0xd   :  { %137 = vmatprep.subr.mxu0 %v348_v0  ;;  %315 = vmatprep.subr.mxu1 %v348_v0  ;;  %v39_v37 = vld [vmem:[%s644_s0 + $0xc8] sm:$0xff]  ;;  %v22_v38 = vld [vmem:[%s644_s0 + $0x40] sm:$0xff]  ;;  %v25_v40 = vld [vmem:[%s644_s0 + $0x58] sm:$0xff] }
   0xe   :  { %138 = vmatpush1.msra.mxu0 %v55_v7  ;;  %334 = vmatpush1.msra.mxu1 %v55_v7  ;;  %v38_v39 = vld [vmem:[%s644_s0 + $0xc0] sm:$0xff]  ;;  %v41_v41 = vld [vmem:[%s644_s0 + $0xd8] sm:$0xff]  ;;  %v24_v42 = vld [vmem:[%s644_s0 + $0x50] sm:$0xff] }
   0xf   :  { %139 = vmatprep.subr.mxu0 %v348_v0  ;;  %316 = vmatprep.subr.mxu1 %v348_v0  ;;  %v40_v43 = vld [vmem:[%s644_s0 + $0xd0] sm:$0xff]  ;;  %v27_v44 = vld [vmem:[%s644_s0 + $0x68] sm:$0xff]  ;;  %v26_v46 = vld [vmem:[%s644_s0 + $0x60] sm:$0xff] }
  0x10   :  { %140 = vmatpush1.msra.mxu0 %v54_v8  ;;  %335 = vmatpush1.msra.mxu1 %v54_v8  ;;  %v43_v45 = vld [vmem:[%s644_s0 + $0xe8] sm:$0xff]  ;;  %v42_v47 = vld [vmem:[%s644_s0 + $0xe0] sm:$0xff]  ;;  %v29_v48 = vld [vmem:[%s644_s0 + $0x78] sm:$0xff] }
  0x11   :  { %141 = vmatprep.subr.mxu0 %v348_v0  ;;  %317 = vmatprep.subr.mxu1 %v348_v0  ;;  %v45_v49 = vld [vmem:[%s644_s0 + $0xf8] sm:$0xff]  ;;  %v28_v50 = vld [vmem:[%s644_s0 + $0x70] sm:$0xff]  ;;  %v291_v52 = vld [vmem:[%s645_s2] ss:$0 sm:$0xff] }
  0x12   :  { %142 = vmatpush1.msra.mxu0 %v53_v9  ;;  %336 = vmatpush1.msra.mxu1 %v53_v9  ;;  %v44_v51 = vld [vmem:[%s644_s0 + $0xf0] sm:$0xff] }
  0x13   :  { %143 = vmatprep.subr.mxu0 %v348_v0  ;;  %318 = vmatprep.subr.mxu1 %v348_v0 }
  0x14   :  { %144 = vmatpush1.msra.mxu0 %v52_v10  ;;  %337 = vmatpush1.msra.mxu1 %v52_v10 }
  0x15   :  { %145 = vmatprep.subr.mxu0 %v348_v0  ;;  %319 = vmatprep.subr.mxu1 %v348_v0 }
  0x16   :  { %146 = vmatpush1.msra.mxu0 %v51_v11  ;;  %338 = vmatpush1.msra.mxu1 %v51_v11 }
  0x17   :  { %147 = vmatprep.subr.mxu0 %v348_v0  ;;  %320 = vmatprep.subr.mxu1 %v348_v0 }
  0x18   :  { %148 = vmatpush1.msra.mxu0 %v50_v12  ;;  %339 = vmatpush1.msra.mxu1 %v50_v12 }
  0x19   :  { %149 = vmatprep.subr.mxu0 %v348_v0  ;;  %321 = vmatprep.subr.mxu1 %v348_v0 }
  0x1a   :  { %150 = vmatpush1.msra.mxu0 %v49_v13  ;;  %340 = vmatpush1.msra.mxu1 %v49_v13 }
  0x1b   :  { %151 = vmatprep.subr.mxu0 %v348_v0  ;;  %322 = vmatprep.subr.mxu1 %v348_v0 }
  0x1c   :  { %152 = vmatpush1.msra.mxu0 %v48_v14  ;;  %341 = vmatpush1.msra.mxu1 %v48_v14 }
  0x1d   :  { %153 = vmatprep.subr.mxu0 %v348_v0  ;;  %323 = vmatprep.subr.mxu1 %v348_v0 }
  0x1e   :  { %154 = vmatpush1.msra.mxu0 %v47_v15  ;;  %342 = vmatpush1.msra.mxu1 %v47_v15 }
  0x1f   :  { %155 = vmatprep.subr.mxu0 %v348_v0  ;;  %324 = vmatprep.subr.mxu1 %v348_v0 }
  0x20   :  { %156 = vmatpush1.msra.mxu0 %v46_v16  ;;  %343 = vmatpush1.msra.mxu1 %v46_v16 }
  0x21   :  { %183 = vmatprep.subr.mxu0 %v348_v0  ;;  %325 = vmatprep.subr.mxu1 %v348_v0 }
  0x22   :  { %292 = vmatpush2.msk.msra.mxu0 %vm121_vm0, %v64_v17  ;;  %344 = vmatpush2.msk.msra.mxu1 %vm121_vm0, %v64_v17 }
  0x23   :  { %185 = vmatprep.subr.mxu0 %v348_v0  ;;  %326 = vmatprep.subr.mxu1 %v348_v0 }
  0x24   :  { %186 = vmatpush2.msra.mxu0 %v63_v18  ;;  %345 = vmatpush2.msra.mxu1 %v63_v18 }
  0x25   :  { %187 = vmatprep.subr.mxu0 %v348_v0  ;;  %327 = vmatprep.subr.mxu1 %v348_v0 }
  0x26   :  { %188 = vmatpush2.msra.mxu0 %v62_v19  ;;  %346 = vmatpush2.msra.mxu1 %v62_v19 }
  0x27   :  { %293 = vmatprep.mubr.msk.f32.mxu0 %vm72_vm1, %v15_v20  ;;  %301 = vmatprep.mubr.msk.f32.mxu1 %vm72_vm1, %v31_v21 }
  0x28   :  { %190 = vmatmul.mubr.f32.vlgmr.msra.gmra.mxu0 %v14_v22  ;;  %230 = vmatmul.mubr.f32.vlgmr.msra.gmra.mxu1 %v30_v23 }
  0x29   :  { %294 = vmatprep.mubr.msk.f32.mxu0 %vm72_vm1, %v17_v24  ;;  %302 = vmatprep.mubr.msk.f32.mxu1 %vm72_vm1, %v33_v25 }
  0x2c   :  { %195 = vmatmul.mubr.f32.gmra.mxu0 %v16_v26  ;;  %235 = vmatmul.mubr.f32.gmra.mxu1 %v32_v27 }
  0x2d   :  { %295 = vmatprep.mubr.msk.f32.mxu0 %vm72_vm1, %v19_v28  ;;  %303 = vmatprep.mubr.msk.f32.mxu1 %vm72_vm1, %v35_v29 }
  0x30   :  { %200 = vmatmul.mubr.f32.gmra.mxu0 %v18_v30  ;;  %240 = vmatmul.mubr.f32.gmra.mxu1 %v34_v31 }
  0x31   :  { %296 = vmatprep.mubr.msk.f32.mxu0 %vm72_vm1, %v21_v32  ;;  %304 = vmatprep.mubr.msk.f32.mxu1 %vm72_vm1, %v37_v33 }
  0x34   :  { %205 = vmatmul.mubr.f32.gmra.mxu0 %v20_v34  ;;  %245 = vmatmul.mubr.f32.gmra.mxu1 %v36_v35 }
  0x35   :  { %297 = vmatprep.mubr.msk.f32.mxu0 %vm72_vm1, %v23_v36  ;;  %305 = vmatprep.mubr.msk.f32.mxu1 %vm72_vm1, %v39_v37 }
  0x38   :  { %210 = vmatmul.mubr.f32.gmra.mxu0 %v22_v38  ;;  %250 = vmatmul.mubr.f32.gmra.mxu1 %v38_v39 }
  0x39   :  { %298 = vmatprep.mubr.msk.f32.mxu0 %vm72_vm1, %v25_v40  ;;  %306 = vmatprep.mubr.msk.f32.mxu1 %vm72_vm1, %v41_v41 }
  0x3c   :  { %215 = vmatmul.mubr.f32.gmra.mxu0 %v24_v42  ;;  %255 = vmatmul.mubr.f32.gmra.mxu1 %v40_v43 }
  0x3d   :  { %299 = vmatprep.mubr.msk.f32.mxu0 %vm72_vm1, %v27_v44  ;;  %307 = vmatprep.mubr.msk.f32.mxu1 %vm72_vm1, %v43_v45 }
  0x40   :  { %220 = vmatmul.mubr.f32.gmra.mxu0 %v26_v46  ;;  %260 = vmatmul.mubr.f32.gmra.mxu1 %v42_v47 }
  0x41   :  { %300 = vmatprep.mubr.msk.f32.mxu0 %vm72_vm1, %v29_v48  ;;  %308 = vmatprep.mubr.msk.f32.mxu1 %vm72_vm1, %v45_v49 }
  0x44   :  { %225 = vmatmul.mubr.f32.gmra.mxu0 %v28_v50  ;;  %265 = vmatmul.mubr.f32.gmra.mxu1 %v44_v51 }
  0xe8   :  { %v191_v53 = vpop.f32.mrf.mxu0  ;;  %v231_v54 = vpop.f32.mrf.mxu1 }
  0xe9   :  { %v192_v55 = vadd.f32 %v291_v52, %v191_v53  ;;  %v232_v56 = vadd.f32 %v291_v52, %v231_v54 }
  0xea   :  { %v193_v57 = vpop.f32.mrf.mxu0  ;;  %v233_v58 = vpop.f32.mrf.mxu1 }
  0xeb   :  { %271 = vst.msk [vmem:[%s646_s3] sm:$0xff] %vm270_vm2, %v192_v55  ;;  %279 = vst.msk [vmem:[%s646_s3 + $0x40] sm:$0xff] %vm270_vm2, %v232_v56 }
  0xec   :  { %v196_v59 = vpop.f32.mrf.mxu0  ;;  %v236_v60 = vpop.f32.mrf.mxu1 }
  0xed   :  { %v197_v61 = vadd.f32 %v291_v52, %v196_v59  ;;  %v237_v62 = vadd.f32 %v291_v52, %v236_v60 }
  0xee   :  { %v198_v63 = vpop.f32.mrf.mxu0  ;;  %v238_v0 = vpop.f32.mrf.mxu1 }
  0xef   :  { %272 = vst.msk [vmem:[%s646_s3 + $0x8] sm:$0xff] %vm270_vm2, %v197_v61  ;;  %280 = vst.msk [vmem:[%s646_s3 + $0x48] sm:$0xff] %vm270_vm2, %v237_v62 }
  0xf0   :  { %v201_v1 = vpop.f32.mrf.mxu0  ;;  %v241_v2 = vpop.f32.mrf.mxu1 }
  0xf1   :  { %v202_v3 = vadd.f32 %v291_v52, %v201_v1  ;;  %v242_v4 = vadd.f32 %v291_v52, %v241_v2 }
  0xf2   :  { %v203_v5 = vpop.f32.mrf.mxu0  ;;  %v243_v6 = vpop.f32.mrf.mxu1 }
  0xf3   :  { %273 = vst.msk [vmem:[%s646_s3 + $0x10] sm:$0xff] %vm270_vm2, %v202_v3  ;;  %281 = vst.msk [vmem:[%s646_s3 + $0x50] sm:$0xff] %vm270_vm2, %v242_v4 }
  0xf4   :  { %v206_v7 = vpop.f32.mrf.mxu0  ;;  %v246_v8 = vpop.f32.mrf.mxu1 }
  0xf5   :  { %v207_v9 = vadd.f32 %v291_v52, %v206_v7  ;;  %v247_v10 = vadd.f32 %v291_v52, %v246_v8 }
  0xf6   :  { %v208_v11 = vpop.f32.mrf.mxu0  ;;  %v248_v12 = vpop.f32.mrf.mxu1 }
  0xf7   :  { %274 = vst.msk [vmem:[%s646_s3 + $0x18] sm:$0xff] %vm270_vm2, %v207_v9  ;;  %282 = vst.msk [vmem:[%s646_s3 + $0x58] sm:$0xff] %vm270_vm2, %v247_v10 }
  0xf8   :  { %v211_v13 = vpop.f32.mrf.mxu0  ;;  %v251_v14 = vpop.f32.mrf.mxu1 }
  0xf9   :  { %v212_v15 = vadd.f32 %v291_v52, %v211_v13  ;;  %v252_v16 = vadd.f32 %v291_v52, %v251_v14 }
  0xfa   :  { %v213_v17 = vpop.f32.mrf.mxu0  ;;  %v253_v18 = vpop.f32.mrf.mxu1 }
  0xfb   :  { %275 = vst.msk [vmem:[%s646_s3 + $0x20] sm:$0xff] %vm270_vm2, %v212_v15  ;;  %283 = vst.msk [vmem:[%s646_s3 + $0x60] sm:$0xff] %vm270_vm2, %v252_v16 }
  0xfc   :  { %v216_v19 = vpop.f32.mrf.mxu0  ;;  %v256_v20 = vpop.f32.mrf.mxu1 }
  0xfd   :  { %v217_v21 = vadd.f32 %v291_v52, %v216_v19  ;;  %v257_v22 = vadd.f32 %v291_v52, %v256_v20 }
  0xfe   :  { %v218_v23 = vpop.f32.mrf.mxu0  ;;  %v258_v24 = vpop.f32.mrf.mxu1 }
  0xff   :  { %276 = vst.msk [vmem:[%s646_s3 + $0x28] sm:$0xff] %vm270_vm2, %v217_v21  ;;  %284 = vst.msk [vmem:[%s646_s3 + $0x68] sm:$0xff] %vm270_vm2, %v257_v22 }
 0x100   :  { %v221_v25 = vpop.f32.mrf.mxu0  ;;  %v261_v26 = vpop.f32.mrf.mxu1 }
 0x101   :  { %v222_v27 = vadd.f32 %v291_v52, %v221_v25  ;;  %v262_v28 = vadd.f32 %v291_v52, %v261_v26 }
 0x102   :  { %v223_v29 = vpop.f32.mrf.mxu0  ;;  %v263_v30 = vpop.f32.mrf.mxu1 }
 0x103   :  { %277 = vst.msk [vmem:[%s646_s3 + $0x30] sm:$0xff] %vm270_vm2, %v222_v27  ;;  %285 = vst.msk [vmem:[%s646_s3 + $0x70] sm:$0xff] %vm270_vm2, %v262_v28 }
 0x104   :  { %v226_v31 = vpop.f32.mrf.mxu0  ;;  %v266_v32 = vpop.f32.mrf.mxu1 }
 0x105   :  { %v227_v33 = vadd.f32 %v291_v52, %v226_v31  ;;  %v267_v34 = vadd.f32 %v291_v52, %v266_v32 }
 0x106   :  { %v228_v35 = vpop.f32.mrf.mxu0  ;;  %v268_v36 = vpop.f32.mrf.mxu1 }
 0x107   :  { %278 = vst.msk [vmem:[%s646_s3 + $0x38] sm:$0xff] %vm270_vm2, %v227_v33  ;;  %286 = vst.msk [vmem:[%s646_s3 + $0x78] sm:$0xff] %vm270_vm2, %v267_v34 }

// kernel: lenet_forward.9
= control target key start
LH: loop header
LB: loop body
LE: loop exit
PB: predicated region body
PF: predicated region fallthrough
CT: control target
= control target key end

     0   :  { %v509_v4 = vmov 0.0   ;;  %s774_s0 = inlined_call_operand.vmem [shape: f32[2,256], index: 0, kind: input, shape index: {}]   ;;  %s775_s1 = inlined_call_operand.vmem [shape: f32[256,120], index: 1, kind: input, shape index: {}]   ;;  %s776_s2 = inlined_call_operand.vmem [shape: f32[1,120], index: 2, kind: input, shape index: {}]   ;;  %s777_s3 = inlined_call_operand.vmem [shape: f32[120,84], index: 3, kind: input, shape index: {}]   ;;  %s778_s4 = inlined_call_operand.vmem [shape: f32[1,84], index: 4, kind: input, shape index: {}]   ;;  %s779_s5 = inlined_call_operand.vmem [shape: f32[84,10], index: 5, kind: input, shape index: {}]   ;;  %s780_s6 = inlined_call_operand.vmem [shape: f32[1,10], index: 6, kind: input, shape index: {}]   ;;  %s781_s7 = inlined_call_operand.hbm [shape: f32[2,10], index: 7, kind: output, shape index: {}]  }
   0x1   :  { %v59_v0 = vld [vmem:[%s775_s1 + $0xf8] sm:$0xff]  ;;  %v58_v2 = vld [vmem:[%s775_s1 + $0xf0] sm:$0xff]  ;;  %426 = vmatprep.subr.mxu1 %v509_v4  ;;  %v57_v5 = vld [vmem:[%s775_s1 + $0xe8] sm:$0xff] }
   0x2   :  { %v43_v1 = vld [vmem:[%s775_s1 + $0x78] sm:$0xff]  ;;  %363 = vmatprep.subr.mxu0 %v59_v0  ;;  %v42_v3 = vld [vmem:[%s775_s1 + $0x70] sm:$0xff]  ;;  %v41_v6 = vld [vmem:[%s775_s1 + $0x68] sm:$0xff] }
   0x3   :  { %364 = vmatpush3.msra.mxu0 %v43_v1  ;;  %v56_v7 = vld [vmem:[%s775_s1 + $0xe0] sm:$0xff]  ;;  %v55_v9 = vld [vmem:[%s775_s1 + $0xd8] sm:$0xff]  ;;  %v54_v11 = vld [vmem:[%s775_s1 + $0xd0] sm:$0xff] }
   0x4   :  { %365 = vmatprep.subr.mxu0 %v58_v2  ;;  %v40_v8 = vld [vmem:[%s775_s1 + $0x60] sm:$0xff]  ;;  %v39_v10 = vld [vmem:[%s775_s1 + $0x58] sm:$0xff]  ;;  %v38_v12 = vld [vmem:[%s775_s1 + $0x50] sm:$0xff] }
   0x5   :  { %366 = vmatpush3.msra.mxu0 %v42_v3  ;;  %v53_v13 = vld [vmem:[%s775_s1 + $0xc8] sm:$0xff]  ;;  %v595_v14 = vld.sshfl [vmem:[%s774_s0] sm:$0x33 pattern:$0x76325410]  ;;  %v162_v17 = vld [vmem:[%s777_s3 + $0x70] sm:$0xff] }
   0x6   :  { %367 = vmatprep.subr.mxu0 %v57_v5  ;;  %v37_v15 = vld [vmem:[%s775_s1 + $0x48] sm:$0xff]  ;;  %v75_v16 = vcombine.high %v595_v14, %v595_v14  ;;  %v52_v18 = vld [vmem:[%s775_s1 + $0xc0] sm:$0xff]  ;;  %427 = vmatpush3.msra.mxu1 %v162_v17  ;;  %v51_v21 = vld [vmem:[%s775_s1 + $0xb8] sm:$0xff] }
   0x7   :  { %368 = vmatpush3.msra.mxu0 %v41_v6  ;;  %v161_v19 = vld [vmem:[%s777_s3 + $0x68] sm:$0xff]  ;;  %v36_v20 = vld [vmem:[%s775_s1 + $0x40] sm:$0xff]  ;;  %428 = vmatprep.subr.mxu1 %v509_v4 }
   0x8   :  { %369 = vmatprep.subr.mxu0 %v56_v7  ;;  %142 = vmatprep.mubr.f32.mxu0 %v75_v16  ;;  %v160_v22 = vld [vmem:[%s777_s3 + $0x60] sm:$0xff] }
   0x9   :  { %370 = vmatpush3.msra.mxu0 %v40_v8 }
   0xa   :  { %371 = vmatprep.subr.mxu0 %v55_v9 }
   0xb   :  { %372 = vmatpush3.msra.mxu0 %v39_v10 }
   0xc   :  { %373 = vmatprep.subr.mxu0 %v54_v11 }
   0xd   :  { %374 = vmatpush3.msra.mxu0 %v38_v12 }
   0xe   :  { %375 = vmatprep.subr.mxu0 %v53_v13 }
   0xf   :  { %376 = vmatpush3.msra.mxu0 %v37_v15 }
  0x10   :  { %12 = vsyncpa [#allocation3], 0  ;;  %377 = vmatprep.subr.mxu0 %v52_v18  ;;  %v35_v23 = vld [vmem:[%s775_s1 + $0x38] sm:$0xff]  ;;  %429 = vmatpush3.msra.mxu1 %v161_v19  ;;  %v50_v24 = vld [vmem:[%s775_s1 + $0xb0] sm:$0xff]  ;;  %vm510_vm0 = vmmov 0   ;;  %vm170_vm1 = vcmask 982016  }
  0x11   :  { %378 = vmatpush3.msra.mxu0 %v36_v20  ;;  %430 = vmatprep.subr.mxu1 %v509_v4  ;;  %v159_v25 = vld [vmem:[%s777_s3 + $0x58] sm:$0xff]  ;;  %v34_v26 = vld [vmem:[%s775_s1 + $0x30] sm:$0xff]  ;;  %v49_v27 = vld [vmem:[%s775_s1 + $0xa8] sm:$0xff]  ;;  %vm266_vm2 = vcmask 1043456   ;;  %vm262_vm3 = vcmask 687104   ;;  %s511_s25 = smov [#allocation2]  }
  0x12   :  { %379 = vmatprep.subr.mxu0 %v51_v21  ;;  %431 = vmatpush3.msra.mxu1 %v160_v22  ;;  %v158_v28 = vld [vmem:[%s777_s3 + $0x50] sm:$0xff]  ;;  %v33_v29 = vld [vmem:[%s775_s1 + $0x28] sm:$0xff]  ;;  %v48_v30 = vld [vmem:[%s775_s1 + $0xa0] sm:$0xff]  ;;  %s348_s26 = sshll.u32 %s511_s25, 4  ;;  %vm340_vm4 = vcmask 74752   ;;  %s349_s26 = int_to_ptr.vmem [resolvable:$true] %s348_s26 }
  0x13   :  { %380 = vmatpush3.msra.mxu0 %v35_v23  ;;  %432 = vmatprep.subr.mxu1 %v509_v4  ;;  %v157_v31 = vld [vmem:[%s777_s3 + $0x48] sm:$0xff]  ;;  %v32_v32 = vld [vmem:[%s775_s1 + $0x20] sm:$0xff]  ;;  %v47_v33 = vld [vmem:[%s775_s1 + $0x98] sm:$0xff]  ;;  %p492_p1 = scmp.lt.s32.totalorder %s349_s26, %s349_s26 }
  0x14   :  { %381 = vmatprep.subr.mxu0 %v50_v24  ;;  %433 = vmatpush3.msra.mxu1 %v159_v25  ;;  %v156_v34 = vld [vmem:[%s777_s3 + $0x40] sm:$0xff]  ;;  %v31_v35 = vld [vmem:[%s775_s1 + $0x18] sm:$0xff]  ;;  %v46_v36 = vld [vmem:[%s775_s1 + $0x90] sm:$0xff] }
  0x15   :  { %382 = vmatpush3.msra.mxu0 %v34_v26  ;;  %434 = vmatprep.subr.mxu1 %v509_v4  ;;  %v155_v37 = vld [vmem:[%s777_s3 + $0x38] sm:$0xff]  ;;  %v30_v38 = vld [vmem:[%s775_s1 + $0x10] sm:$0xff]  ;;  %v45_v39 = vld [vmem:[%s775_s1 + $0x88] sm:$0xff] }
  0x16   :  { %383 = vmatprep.subr.mxu0 %v49_v27  ;;  %435 = vmatpush3.msra.mxu1 %v158_v28  ;;  %v154_v40 = vld [vmem:[%s777_s3 + $0x30] sm:$0xff]  ;;  %v29_v41 = vld [vmem:[%s775_s1 + $0x8] sm:$0xff]  ;;  %v44_v42 = vld [vmem:[%s775_s1 + $0x80] sm:$0xff] }
  0x17   :  { %384 = vmatpush3.msra.mxu0 %v33_v29  ;;  %436 = vmatprep.subr.mxu1 %v509_v4  ;;  %v153_v43 = vld [vmem:[%s777_s3 + $0x28] sm:$0xff]  ;;  %v28_v44 = vld [vmem:[%s775_s1] sm:$0xff]  ;;  %v151_v46 = vld [vmem:[%s777_s3 + $0x18] sm:$0xff] }
  0x18   :  { %385 = vmatprep.subr.mxu0 %v48_v30  ;;  %437 = vmatpush3.msra.mxu1 %v157_v31  ;;  %v152_v45 = vld [vmem:[%s777_s3 + $0x20] sm:$0xff]  ;;  %v150_v47 = vld [vmem:[%s777_s3 + $0x10] sm:$0xff]  ;;  %v149_v48 = vld [vmem:[%s777_s3 + $0x8] sm:$0xff] }
  0x19   :  { %386 = vmatpush3.msra.mxu0 %v32_v32  ;;  %438 = vmatprep.subr.mxu1 %v509_v4  ;;  %v148_v49 = vld [vmem:[%s777_s3] sm:$0xff]  ;;  %v254_v55 = vld [vmem:[%s779_s5 + $0x50] sm:$0xf]  ;;  %v253_v56 = vld [vmem:[%s779_s5 + $0x48] sm:$0xff] }
  0x1a   :  { %387 = vmatprep.subr.mxu0 %v47_v33  ;;  %439 = vmatpush3.msra.mxu1 %v156_v34  ;;  %v356_v51 = vld [vmem:[%s776_s2] ss:$0 sm:$0xff]  ;;  %v251_v58 = vld [vmem:[%s779_s5 + $0x38] sm:$0xff]  ;;  %v250_v59 = vld [vmem:[%s779_s5 + $0x30] sm:$0xff] }
  0x1b   :  { %388 = vmatpush3.msra.mxu0 %v31_v35  ;;  %440 = vmatprep.subr.mxu1 %v509_v4  ;;  %v252_v57 = vld [vmem:[%s779_s5 + $0x40] sm:$0xff]  ;;  %v249_v60 = vld [vmem:[%s779_s5 + $0x28] sm:$0xff]  ;;  %v247_v62 = vld [vmem:[%s779_s5 + $0x18] sm:$0xff] }
  0x1c   :  { %389 = vmatprep.subr.mxu0 %v46_v36  ;;  %441 = vmatpush3.msra.mxu1 %v155_v37  ;;  %v248_v61 = vld [vmem:[%s779_s5 + $0x20] sm:$0xff]  ;;  %v246_v63 = vld [vmem:[%s779_s5 + $0x10] sm:$0xff]  ;;  %v245_v0 = vld [vmem:[%s779_s5 + $0x8] sm:$0xff] }
  0x1d   :  { %390 = vmatpush3.msra.mxu0 %v30_v38  ;;  %442 = vmatprep.subr.mxu1 %v509_v4  ;;  %v244_v1 = vld [vmem:[%s779_s5] sm:$0xff]  ;;  %s487_s5 = scalar_lea.vmem %s349_s26, 32 }
  0x1e   :  { %391 = vmatprep.subr.mxu0 %v45_v39  ;;  %443 = vmatpush3.msra.mxu1 %v154_v40  ;;  %v358_v2 = vld [vmem:[%s778_s4] ss:$0 sm:$0xff]  ;;  %p488_p0 = scmp.ne.s32.totalorder %s349_s26, %s487_s5  ;;  %p493_p2 = scmp.lt.s32.totalorder %s487_s5, %s487_s5 }
  0x1f   :  { %392 = vmatpush3.msra.mxu0 %v29_v41  ;;  %444 = vmatprep.subr.mxu1 %v509_v4  ;;  %v360_v7 = vld [vmem:[%s780_s6] ss:$0 sm:$0xff] }
  0x20   :  { %393 = vmatprep.subr.mxu0 %v44_v42  ;;  %445 = vmatpush3.msra.mxu1 %v153_v43  ;;  %p494_p3 = por %p493_p2, %p492_p1 }
  0x21   :  { %394 = vmatpush3.msra.mxu0 %v28_v44  ;;  %446 = vmatprep.subr.mxu1 %v509_v4 }
  0x22   :  { %143 = vmatmul.mubr.f32.vlgmr.msra.gmra.mxu0 %v595_v14  ;;  %447 = vmatpush3.msra.mxu1 %v152_v45  ;;  %p495_p4 = pnand %p494_p3, %p488_p0 }
  0x23   :  { %448 = vmatprep.subr.mxu1 %v509_v4  ;;  %456 = vmatprep.mubr.msk.f32.mxu1 %vm510_vm0, %v509_v4 }
  0x24   :  { %449 = vmatpush3.msra.mxu1 %v151_v46 }
  0x25   :  { %450 = vmatprep.subr.mxu1 %v509_v4 }
  0x26   :  { %451 = vmatpush3.msra.mxu1 %v150_v47 }
  0x27   :  { %452 = vmatprep.subr.mxu1 %v509_v4 }
  0x28   :  { %453 = vmatpush3.msra.mxu1 %v149_v48 }
  0x29   :  { %454 = vmatprep.subr.mxu1 %v509_v4 }
  0x2a   :  { %455 = vmatpush3.msra.mxu1 %v148_v49 }
  0x2b   :  { %459 = vmatprep.subr.mxu1 %v509_v4 }
  0xe2   :  { %v395_v50 = vpop.f32.mrf.mxu0 }
  0xe4   :  { %v396_v52 = vpop.f32.mrf.mxu0 }
  0xe5   :  { %v397_v53 = vadd.f32 %v396_v52, %v395_v50 }
  0xe7   :  { %v145_v54 = vadd.f32 %v397_v53, %v356_v51 }
  0xe9   :  { %457 = vmatmul.mubr.msk.f32.vlgmr.msra.gmra.mxu1 %vm170_vm1, %v145_v54 }
  0xea   :  { %460 = vmatpush3.msk.msra.mxu1 %vm266_vm2, %v254_v55  ;;  %481 = vmatprep.mubr.msk.f32.mxu1 %vm510_vm0, %v509_v4 }
  0xeb   :  { %461 = vmatprep.subr.mxu1 %v509_v4 }
  0xec   :  { %462 = vmatpush3.msra.mxu1 %v253_v56 }
  0xed   :  { %463 = vmatprep.subr.mxu1 %v509_v4 }
  0xee   :  { %464 = vmatpush3.msra.mxu1 %v252_v57 }
  0xef   :  { %465 = vmatprep.subr.mxu1 %v509_v4 }
  0xf0   :  { %466 = vmatpush3.msra.mxu1 %v251_v58 }
  0xf1   :  { %467 = vmatprep.subr.mxu1 %v509_v4 }
  0xf2   :  { %468 = vmatpush3.msra.mxu1 %v250_v59 }
  0xf3   :  { %469 = vmatprep.subr.mxu1 %v509_v4 }
  0xf4   :  { %470 = vmatpush3.msra.mxu1 %v249_v60 }
  0xf5   :  { %471 = vmatprep.subr.mxu1 %v509_v4 }
  0xf6   :  { %472 = vmatpush3.msra.mxu1 %v248_v61 }
  0xf7   :  { %473 = vmatprep.subr.mxu1 %v509_v4 }
  0xf8   :  { %474 = vmatpush3.msra.mxu1 %v247_v62 }
  0xf9   :  { %475 = vmatprep.subr.mxu1 %v509_v4 }
  0xfa   :  { %476 = vmatpush3.msra.mxu1 %v246_v63 }
  0xfb   :  { %477 = vmatprep.subr.mxu1 %v509_v4 }
  0xfc   :  { %478 = vmatpush3.msra.mxu1 %v245_v0 }
  0xfd   :  { %479 = vmatprep.subr.mxu1 %v509_v4 }
  0xfe   :  { %480 = vmatpush3.msra.mxu1 %v244_v1 }
 0x1a9   :  { %v240_v3 = vpop.f32.mrf.mxu1 }
 0x1aa   :  { %v241_v5 = vadd.f32 %v358_v2, %v240_v3 }
 0x1ab   :  { %v458_v6 = vpop.f32.mrf.mxu1 }
 0x1ac   :  { %482 = vmatmul.mubr.msk.f32.vlgmr.msra.gmra.mxu1 %vm262_vm3, %v241_v5 }
 0x26c   :  { %v336_v4 = vpop.f32.mrf.mxu1 }
 0x26d   :  { %v337_v8 = vadd.f32 %v360_v7, %v336_v4 }
 0x26e   :  { %v483_v9 = vpop.f32.mrf.mxu1 }
 0x26f   :  { %341 = vst.msk [vmem:[#allocation2] sm:$0x3] %vm340_vm4, %v337_v8 }
 0x270   :  { %498 = shalt.err (!%p495_p4)
}
 0x271   :  { %351 = dma.vmem_to_hbm [thread:$0]  %s349_s26, 32, %s781_s7, [#allocation3]  }
 0x272   :  { %507 = dma.done.wait [#allocation3], 32  }
 0x273   :  { %508 = vsyncadd [#allocation3], 4294967264 }
 0x274   :  { %355 = vsyncpa [#allocation3], 1 }

</bundles_post_ra>
